<compile_context>
chip_gen: v7x
topology: tpu7x:2x2x1
jax: 0.10.0
libtpu: 0.0.40
codegen_flags: <defaults>
</compile_context>

<pallas_src>
import functools

import jax
import jax.numpy as jnp
from jax.experimental import pallas as pl
from jax.experimental.pallas import tpu as pltpu


def _round_up(x, m):
    return ((x + m - 1) // m) * m


# ----------------------------------------------------------------------------
# Fused whole-stack kernel: one (batch, time-tile) grid point
# ----------------------------------------------------------------------------
def _stack_kernel(xm_ref, xh_ref, w_ref, o_ref, *,
                  K, dils, tT, T, HlR, L, R, l_halo, p2l, C, fuse, n_blocks):
    # xm_ref: (1, tT, C)  bf16   main rows of the padded activation for this tile
    # xh_ref: (1, HALO, C) bf16  the HALO rows immediately after the main block
    # w_ref : (2*n_blocks, K*C, C) bf16  stacked weight-normed conv matrices (VMEM resident)
    # o_ref : (1, tT, C)  bf16
    t = pl.program_id(1)
    t_base = t * tT                       # global time of output row 0 of this tile

    def mask_rows(v, time_row0):
        # zero rows whose global time is outside [0, T): implements each conv's own
        # "same" zero padding (this was the correctness bug in the previous version).
        rows = jax.lax.broadcasted_iota(jnp.int32, (v.shape[0], 1), 0) + time_row0
        ok = jnp.logical_and(rows >= 0, rows < T)
        return jnp.where(ok, v, jnp.zeros_like(v))

    def leaky(v):
        return jnp.where(v > 0.0, v, 0.2 * v)

    def conv(a, w2d, d, out_len):
        # a: (n, C) f32, taps at rows q + k*d ; w2d: (K*C, C) bf16 (rows grouped by tap)
        taps = [a[k * d:k * d + out_len, :].astype(jnp.bfloat16) for k in range(K)]
        if fuse and K > 1:
            lhs = jnp.concatenate(taps, axis=-1)              # (out_len, K*C)
            return jnp.dot(lhs, w2d, preferred_element_type=jnp.float32)
        acc = jnp.dot(taps[0], w2d[0:C, :], preferred_element_type=jnp.float32)
        for k in range(1, K):
            acc = acc + jnp.dot(taps[k], w2d[k * C:(k + 1) * C, :],
                                preferred_element_type=jnp.float32)
        return acc

    # full input window for this tile: (tT + HALO, C), row w <-> global time t_base + w - HlR
    xw = jnp.concatenate([xm_ref[0], xh_ref[0]], axis=0).astype(jnp.float32)
    d0 = HlR - L[0]
    cur = xw[d0: d0 + tT + L[0] + R[0], :]   # covers local times [-L0, tT + R0)

    for i in range(n_blocks):
        d = dils[i]
        # LeakyReLU + zero outside [0, T) (conv1's own padding / boundary semantics)
        a = mask_rows(leaky(cur), t_base - L[i])
        # conv1 (dilation d): intermediate over local times [-L[i+1]-p2l, tT+R[i+1]+p2r)
        m_i = tT + L[i + 1] + R[i + 1] + (K - 1)
        h = conv(a, w_ref[2 * i], d, m_i)
        # LeakyReLU + zero outside [0, T) (conv2's zero padding of the intermediate)
        h = mask_rows(leaky(h), t_base - L[i + 1] - p2l)
        # conv2 (dilation 1) + residual (pre-activation cur), carried in f32
        n_next = tT + L[i + 1] + R[i + 1]
        y = conv(h, w_ref[2 * i + 1], 1, n_next)
        cur = y + cur[l_halo[i]: l_halo[i] + n_next, :]

    o_ref[0] = cur.astype(o_ref.dtype)


# ----------------------------------------------------------------------------
# Weight preparation (plain-JAX glue)
# ----------------------------------------------------------------------------
def _weight_norm_conv1d(v, g):
    # PyTorch weight_norm with dim=0 on a Conv1d weight (C_out, C_in, K).
    norm = jnp.sqrt(jnp.sum(v * v, axis=(1, 2), keepdims=True))
    return g.reshape(-1, 1, 1) * v / norm


def _stack_weight(v, g):
    # (C_out, C_in, K) -> weight-normed, stacked (K*C_in, C_out) bf16, rows grouped by tap.
    w = _weight_norm_conv1d(v.astype(jnp.float32), g.astype(jnp.float32))
    c_out, c_in, K = w.shape
    w = jnp.transpose(w, (2, 1, 0)).reshape(K * c_in, c_out)
    return w.astype(jnp.bfloat16)


# ----------------------------------------------------------------------------
# ResidualStack forward
# ----------------------------------------------------------------------------
def residual_stack_forward(x, params, *, kernel_size=3, padding_mode="centered",
                           block_t=2048):
    """x: (B, C, T) NCL like PyTorch.  params: list of 3 tuples (v1, g1, v2, g2) of
    weight-norm Conv1d parameters (v: (C, C, K), g: (C,)), bias=False.
    Returns (B, C, T) NCL."""
    B, C, T = x.shape
    K = kernel_size
    n_blocks = len(params)
    dils = [3 ** i for i in range(n_blocks)]

    if padding_mode == "centered":
        assert K % 2 == 1, "centered mode requires odd kernel_size"
        l_halo = [(K - 1) * (d + 1) // 2 for d in dils]
        r_halo = list(l_halo)
        p2l = (K - 1) // 2
    elif padding_mode == "causal":
        l_halo = [(K - 1) * (d + 1) for d in dils]
        r_halo = [0] * n_blocks
        p2l = K - 1
    else:
        raise ValueError(padding_mode)

    L = tuple(sum(l_halo[i:]) for i in range(n_blocks + 1))   # remaining left halo
    R = tuple(sum(r_halo[i:]) for i in range(n_blocks + 1))   # remaining right halo
    HlR = _round_up(L[0], 16)                                  # aligned left pad
    HALO = max(16, _round_up(HlR + R[0], 16))                  # halo block (mult of 16)
    tT = _round_up(max(1, min(block_t, T)), HALO)              # time tile, mult of HALO
    nT = -(-T // tT)
    Tpad = nT * tT + HALO
    halo_stride = tT // HALO

    # NCL -> NLC once, bf16 I/O in HBM, single time pad for halos + tile round-up.
    h_act = jnp.transpose(x, (0, 2, 1)).astype(jnp.bfloat16)
    xpad = jnp.pad(h_act, ((0, 0), (HlR, Tpad - HlR - T), (0, 0)))

    mats = []
    for (v1, g1, v2, g2) in params:
        mats.append(_stack_weight(v1, g1))     # dilated conv
        mats.append(_stack_weight(v2, g2))     # dilation-1 conv
    w_all = jnp.stack(mats, axis=0)            # (2*n_blocks, K*C, C) bf16

    kern = functools.partial(
        _stack_kernel, K=K, dils=tuple(dils), tT=tT, T=T, HlR=HlR,
        L=L, R=R, l_halo=tuple(l_halo), p2l=p2l, C=C,
        fuse=(C <= 128), n_blocks=n_blocks)

    out = pl.pallas_call(
        kern,
        out_shape=jax.ShapeDtypeStruct((B, nT * tT, C), jnp.bfloat16),
        grid=(B, nT),
        in_specs=[
            # main rows of the window (auto double-buffered by Pallas)
            pl.BlockSpec((1, tT, C), lambda b, t: (b, t, 0)),
            # small halo block starting right after the main rows (same padded array)
            pl.BlockSpec((1, HALO, C), lambda b, t: (b, (t + 1) * halo_stride, 0)),
            # all 6 weight matrices, constant index map -> fetched once, VMEM resident
            pl.BlockSpec((2 * n_blocks, K * C, C), lambda b, t: (0, 0, 0)),
        ],
        out_specs=pl.BlockSpec((1, tT, C), lambda b, t: (b, t, 0)),
        compiler_params=pltpu.CompilerParams(
            dimension_semantics=("parallel", "parallel"),
            vmem_limit_bytes=48 * 1024 * 1024),
    )(xpad, xpad, w_all)

    y = out[:, :T, :]
    return jnp.transpose(y, (0, 2, 1)).astype(x.dtype)

# TODO(synk): cached_conv streaming buffers / cumulative_delay + AlignBranches delay
# compensation (causal streaming mode) are runtime state, not part of the stateless
# forward; causal padding is implemented but without delay re-alignment.


# ----------------------------------------------------------------------------
# Pure-JAX reference (correctness check only)
# ----------------------------------------------------------------------------
def _ref_residual_stack(x, params, kernel_size=3, padding_mode="centered"):
    K = kernel_size

    def conv(h, v, g, dil):
        w = _weight_norm_conv1d(v, g)
        p = (K - 1) * dil
        pad = (p, 0) if padding_mode == "causal" else (p // 2, p - p // 2)
        return jax.lax.conv_general_dilated(
            h, w, window_strides=(1,), padding=[pad], rhs_dilation=(dil,),
            dimension_numbers=("NCH", "OIH", "NCH"),
            precision=jax.lax.Precision.HIGHEST)

    def leaky(z):
        return jnp.where(z > 0, z, 0.2 * z)

    for i, (v1, g1, v2, g2) in enumerate(params):
        h = conv(leaky(x), v1, g1, 3 ** i)
        h = conv(leaky(h), v2, g2, 1)
        x = x + h
    return x


# ----------------------------------------------------------------------------
if __name__ == "__main__":
    key = jax.random.PRNGKey(0)
    B, dim, T, K = 2, 32, 100, 3

    keys = jax.random.split(key, 13)
    x = jax.random.normal(keys[0], (B, dim, T), jnp.float32)
    params = []
    for i in range(3):
        kv1, kg1, kv2, kg2 = keys[1 + 4 * i: 5 + 4 * i]
        v1 = 0.1 * jax.random.normal(kv1, (dim, dim, K), jnp.float32)
        g1 = jax.random.uniform(kg1, (dim,), jnp.float32, minval=0.5, maxval=1.5)
        v2 = 0.1 * jax.random.normal(kv2, (dim, dim, K), jnp.float32)
        g2 = jax.random.uniform(kg2, (dim,), jnp.float32, minval=0.5, maxval=1.5)
        params.append((v1, g1, v2, g2))

    fwd = jax.jit(residual_stack_forward,
                  static_argnames=("kernel_size", "padding_mode", "block_t"))

    for mode in ("centered", "causal"):
        ref = _ref_residual_stack(x, params, kernel_size=K, padding_mode=mode)
        scale = float(jnp.max(jnp.abs(ref))) + 1e-6

        # single time tile (nT == 1)
        out = fwd(x, params, kernel_size=K, padding_mode=mode)
        jax.block_until_ready(out)
        assert out.shape == (B, dim, T), out.shape
        err = float(jnp.max(jnp.abs(out - ref))) / scale
        assert err < 5e-2, (mode, err)     # bf16 I/O + bf16 matmul / f32 accumulate

        # multiple time tiles (exercises halo blocks + boundary masking across tiles)
        out_tiled = fwd(x, params, kernel_size=K, padding_mode=mode, block_t=24)
        jax.block_until_ready(out_tiled)
        err_tiled = float(jnp.max(jnp.abs(out_tiled - ref))) / scale
        assert err_tiled < 5e-2, (mode, err_tiled)

    print("KERNEL_OK")
</pallas_src>

<mosaic_0001>
module attributes {stable_mosaic.version = 11 : i64} {
  func.func @_stack_kernel(%arg0: i32, %arg1: i32, %arg2: memref<1x128x32xbf16, #tpu.memory_space<vmem>>, %arg3: memref<1x32x32xbf16, #tpu.memory_space<vmem>>, %arg4: memref<6x96x32xbf16, #tpu.memory_space<vmem>>, %arg5: memref<1x128x32xbf16, #tpu.memory_space<vmem>>) attributes {dimension_semantics = [#tpu.dimension_semantics<parallel>, #tpu.dimension_semantics<parallel>], iteration_bounds = array<i64: 2, 1>, scalar_prefetch = 0 : i64, scratch_operands = 0 : i64, tpu.core_type = #tpu.core_type<tc>, window_params = [{transform_indices = @transform_0, window_bounds = array<i64: 1, 128, 32>}, {transform_indices = @transform_1, window_bounds = array<i64: 1, 32, 32>}, {pipeline_mode = #tpu.pipeline_mode<synchronous>, transform_indices = @transform_2, window_bounds = array<i64: 6, 96, 32>}, {transform_indices = @transform_3, window_bounds = array<i64: 1, 128, 32>}]} {
    %c128_i32 = arith.constant 128 : i32
    %0 = arith.muli %arg1, %c128_i32 : i32
    %c0 = arith.constant 0 : index
    %c0_0 = arith.constant 0 : index
    %c0_1 = arith.constant 0 : index
    %1 = vector.load %arg2[%c0, %c0_0, %c0_1] : memref<1x128x32xbf16, #tpu.memory_space<vmem>>, vector<1x128x32xbf16>
    %2 = vector.shape_cast %1 : vector<1x128x32xbf16> to vector<128x32xbf16>
    %c0_2 = arith.constant 0 : index
    %c0_3 = arith.constant 0 : index
    %c0_4 = arith.constant 0 : index
    %3 = vector.load %arg3[%c0_2, %c0_3, %c0_4] : memref<1x32x32xbf16, #tpu.memory_space<vmem>>, vector<1x32x32xbf16>
    %4 = vector.shape_cast %3 : vector<1x32x32xbf16> to vector<32x32xbf16>
    %5 = tpu.concatenate %2, %4 in 0 : vector<128x32xbf16>, vector<32x32xbf16> -> vector<160x32xbf16>
    %6 = arith.extf %5 : vector<160x32xbf16> to vector<160x32xf32>
    %cst = arith.constant 0.000000e+00 : f32
    %7 = vector.broadcast %cst : f32 to vector<160x32xf32>
    %8 = arith.cmpf ogt, %6, %7 : vector<160x32xf32>
    %cst_5 = arith.constant 2.000000e-01 : f32
    %9 = vector.broadcast %cst_5 : f32 to vector<160x32xf32>
    %10 = arith.mulf %9, %6 : vector<160x32xf32>
    %11 = arith.select %8, %6, %10 : vector<160x32xi1>, vector<160x32xf32>
    %c16_i32 = arith.constant 16 : i32
    %12 = arith.subi %0, %c16_i32 : i32
    %13 = tpu.iota {dimensions = array<i32: 0>} : vector<160x1xi32>
    %14 = vector.broadcast %12 : i32 to vector<160x1xi32>
    %15 = arith.addi %13, %14 : vector<160x1xi32>
    %c0_i32 = arith.constant 0 : i32
    %16 = vector.broadcast %c0_i32 : i32 to vector<160x1xi32>
    %17 = arith.cmpi sge, %15, %16 : vector<160x1xi32>
    %c100_i32 = arith.constant 100 : i32
    %18 = vector.broadcast %c100_i32 : i32 to vector<160x1xi32>
    %19 = arith.cmpi slt, %15, %18 : vector<160x1xi32>
    %20 = arith.andi %17, %19 : vector<160x1xi1>
    %cst_6 = arith.constant 0.000000e+00 : f32
    %21 = vector.broadcast %cst_6 : f32 to vector<160x32xf32>
    %22 = vector.shape_cast %20 : vector<160x1xi1> to vector<160x1xi1>
    %23 = vector.broadcast %22 : vector<160x1xi1> to vector<160x32xi1>
    %24 = arith.select %23, %11, %21 : vector<160x32xi1>, vector<160x32xf32>
    %c0_7 = arith.constant 0 : index
    %c0_8 = arith.constant 0 : index
    %c0_9 = arith.constant 0 : index
    %25 = vector.load %arg4[%c0_7, %c0_8, %c0_9] : memref<6x96x32xbf16, #tpu.memory_space<vmem>>, vector<1x96x32xbf16>
    %26 = vector.shape_cast %25 : vector<1x96x32xbf16> to vector<96x32xbf16>
    %27 = vector.extract_strided_slice %24 {offsets = [0, 0], sizes = [158, 32], strides = [1, 1]} : vector<160x32xf32> to vector<158x32xf32>
    %28 = arith.truncf %27 : vector<158x32xf32> to vector<158x32xbf16>
    %29 = vector.extract_strided_slice %24 {offsets = [1, 0], sizes = [158, 32], strides = [1, 1]} : vector<160x32xf32> to vector<158x32xf32>
    %30 = arith.truncf %29 : vector<158x32xf32> to vector<158x32xbf16>
    %31 = vector.extract_strided_slice %24 {offsets = [2, 0], sizes = [158, 32], strides = [1, 1]} : vector<160x32xf32> to vector<158x32xf32>
    %32 = arith.truncf %31 : vector<158x32xf32> to vector<158x32xbf16>
    %33 = tpu.concatenate %28, %30, %32 in 1 : vector<158x32xbf16>, vector<158x32xbf16>, vector<158x32xbf16> -> vector<158x96xbf16>
    %cst_10 = arith.constant dense<0.000000e+00> : vector<158x32xf32>
    %34 = tpu.matmul %33, %26, %cst_10 {dimension_numbers = #tpu.dot_dimension_numbers<[1], [0], [0], [1], [0, 0, 1, 1], [], []>} : vector<158x96xbf16>, vector<96x32xbf16>, vector<158x32xf32> -> vector<158x32xf32>
    %cst_11 = arith.constant 0.000000e+00 : f32
    %35 = vector.broadcast %cst_11 : f32 to vector<158x32xf32>
    %36 = arith.cmpf ogt, %34, %35 : vector<158x32xf32>
    %cst_12 = arith.constant 2.000000e-01 : f32
    %37 = vector.broadcast %cst_12 : f32 to vector<158x32xf32>
    %38 = arith.mulf %37, %34 : vector<158x32xf32>
    %39 = arith.select %36, %34, %38 : vector<158x32xi1>, vector<158x32xf32>
    %c14_i32 = arith.constant 14 : i32
    %40 = arith.subi %0, %c14_i32 : i32
    %c1_i32 = arith.constant 1 : i32
    %41 = arith.subi %40, %c1_i32 : i32
    %42 = tpu.iota {dimensions = array<i32: 0>} : vector<158x1xi32>
    %43 = vector.broadcast %41 : i32 to vector<158x1xi32>
    %44 = arith.addi %42, %43 : vector<158x1xi32>
    %c0_i32_13 = arith.constant 0 : i32
    %45 = vector.broadcast %c0_i32_13 : i32 to vector<158x1xi32>
    %46 = arith.cmpi sge, %44, %45 : vector<158x1xi32>
    %c100_i32_14 = arith.constant 100 : i32
    %47 = vector.broadcast %c100_i32_14 : i32 to vector<158x1xi32>
    %48 = arith.cmpi slt, %44, %47 : vector<158x1xi32>
    %49 = arith.andi %46, %48 : vector<158x1xi1>
    %cst_15 = arith.constant 0.000000e+00 : f32
    %50 = vector.broadcast %cst_15 : f32 to vector<158x32xf32>
    %51 = vector.shape_cast %49 : vector<158x1xi1> to vector<158x1xi1>
    %52 = vector.broadcast %51 : vector<158x1xi1> to vector<158x32xi1>
    %53 = arith.select %52, %39, %50 : vector<158x32xi1>, vector<158x32xf32>
    %c1 = arith.constant 1 : index
    %c0_16 = arith.constant 0 : index
    %c0_17 = arith.constant 0 : index
    %54 = vector.load %arg4[%c1, %c0_16, %c0_17] : memref<6x96x32xbf16, #tpu.memory_space<vmem>>, vector<1x96x32xbf16>
    %55 = vector.shape_cast %54 : vector<1x96x32xbf16> to vector<96x32xbf16>
    %56 = vector.extract_strided_slice %53 {offsets = [0, 0], sizes = [156, 32], strides = [1, 1]} : vector<158x32xf32> to vector<156x32xf32>
    %57 = arith.truncf %56 : vector<156x32xf32> to vector<156x32xbf16>
    %58 = vector.extract_strided_slice %53 {offsets = [1, 0], sizes = [156, 32], strides = [1, 1]} : vector<158x32xf32> to vector<156x32xf32>
    %59 = arith.truncf %58 : vector<156x32xf32> to vector<156x32xbf16>
    %60 = vector.extract_strided_slice %53 {offsets = [2, 0], sizes = [156, 32], strides = [1, 1]} : vector<158x32xf32> to vector<156x32xf32>
    %61 = arith.truncf %60 : vector<156x32xf32> to vector<156x32xbf16>
    %62 = tpu.concatenate %57, %59, %61 in 1 : vector<156x32xbf16>, vector<156x32xbf16>, vector<156x32xbf16> -> vector<156x96xbf16>
    %cst_18 = arith.constant dense<0.000000e+00> : vector<156x32xf32>
    %63 = tpu.matmul %62, %55, %cst_18 {dimension_numbers = #tpu.dot_dimension_numbers<[1], [0], [0], [1], [0, 0, 1, 1], [], []>} : vector<156x96xbf16>, vector<96x32xbf16>, vector<156x32xf32> -> vector<156x32xf32>
    %64 = vector.extract_strided_slice %6 {offsets = [2, 0], sizes = [156, 32], strides = [1, 1]} : vector<160x32xf32> to vector<156x32xf32>
    %65 = arith.addf %63, %64 : vector<156x32xf32>
    %cst_19 = arith.constant 0.000000e+00 : f32
    %66 = vector.broadcast %cst_19 : f32 to vector<156x32xf32>
    %67 = arith.cmpf ogt, %65, %66 : vector<156x32xf32>
    %cst_20 = arith.constant 2.000000e-01 : f32
    %68 = vector.broadcast %cst_20 : f32 to vector<156x32xf32>
    %69 = arith.mulf %68, %65 : vector<156x32xf32>
    %70 = arith.select %67, %65, %69 : vector<156x32xi1>, vector<156x32xf32>
    %c14_i32_21 = arith.constant 14 : i32
    %71 = arith.subi %0, %c14_i32_21 : i32
    %72 = tpu.iota {dimensions = array<i32: 0>} : vector<156x1xi32>
    %73 = vector.broadcast %71 : i32 to vector<156x1xi32>
    %74 = arith.addi %72, %73 : vector<156x1xi32>
    %c0_i32_22 = arith.constant 0 : i32
    %75 = vector.broadcast %c0_i32_22 : i32 to vector<156x1xi32>
    %76 = arith.cmpi sge, %74, %75 : vector<156x1xi32>
    %c100_i32_23 = arith.constant 100 : i32
    %77 = vector.broadcast %c100_i32_23 : i32 to vector<156x1xi32>
    %78 = arith.cmpi slt, %74, %77 : vector<156x1xi32>
    %79 = arith.andi %76, %78 : vector<156x1xi1>
    %cst_24 = arith.constant 0.000000e+00 : f32
    %80 = vector.broadcast %cst_24 : f32 to vector<156x32xf32>
    %81 = vector.shape_cast %79 : vector<156x1xi1> to vector<156x1xi1>
    %82 = vector.broadcast %81 : vector<156x1xi1> to vector<156x32xi1>
    %83 = arith.select %82, %70, %80 : vector<156x32xi1>, vector<156x32xf32>
    %c2 = arith.constant 2 : index
    %c0_25 = arith.constant 0 : index
    %c0_26 = arith.constant 0 : index
    %84 = vector.load %arg4[%c2, %c0_25, %c0_26] : memref<6x96x32xbf16, #tpu.memory_space<vmem>>, vector<1x96x32xbf16>
    %85 = vector.shape_cast %84 : vector<1x96x32xbf16> to vector<96x32xbf16>
    %86 = vector.extract_strided_slice %83 {offsets = [0, 0], sizes = [150, 32], strides = [1, 1]} : vector<156x32xf32> to vector<150x32xf32>
    %87 = arith.truncf %86 : vector<150x32xf32> to vector<150x32xbf16>
    %88 = vector.extract_strided_slice %83 {offsets = [3, 0], sizes = [150, 32], strides = [1, 1]} : vector<156x32xf32> to vector<150x32xf32>
    %89 = arith.truncf %88 : vector<150x32xf32> to vector<150x32xbf16>
    %90 = vector.extract_strided_slice %83 {offsets = [6, 0], sizes = [150, 32], strides = [1, 1]} : vector<156x32xf32> to vector<150x32xf32>
    %91 = arith.truncf %90 : vector<150x32xf32> to vector<150x32xbf16>
    %92 = tpu.concatenate %87, %89, %91 in 1 : vector<150x32xbf16>, vector<150x32xbf16>, vector<150x32xbf16> -> vector<150x96xbf16>
    %cst_27 = arith.constant dense<0.000000e+00> : vector<150x32xf32>
    %93 = tpu.matmul %92, %85, %cst_27 {dimension_numbers = #tpu.dot_dimension_numbers<[1], [0], [0], [1], [0, 0, 1, 1], [], []>} : vector<150x96xbf16>, vector<96x32xbf16>, vector<150x32xf32> -> vector<150x32xf32>
    %cst_28 = arith.constant 0.000000e+00 : f32
    %94 = vector.broadcast %cst_28 : f32 to vector<150x32xf32>
    %95 = arith.cmpf ogt, %93, %94 : vector<150x32xf32>
    %cst_29 = arith.constant 2.000000e-01 : f32
    %96 = vector.broadcast %cst_29 : f32 to vector<150x32xf32>
    %97 = arith.mulf %96, %93 : vector<150x32xf32>
    %98 = arith.select %95, %93, %97 : vector<150x32xi1>, vector<150x32xf32>
    %c10_i32 = arith.constant 10 : i32
    %99 = arith.subi %0, %c10_i32 : i32
    %c1_i32_30 = arith.constant 1 : i32
    %100 = arith.subi %99, %c1_i32_30 : i32
    %101 = tpu.iota {dimensions = array<i32: 0>} : vector<150x1xi32>
    %102 = vector.broadcast %100 : i32 to vector<150x1xi32>
    %103 = arith.addi %101, %102 : vector<150x1xi32>
    %c0_i32_31 = arith.constant 0 : i32
    %104 = vector.broadcast %c0_i32_31 : i32 to vector<150x1xi32>
    %105 = arith.cmpi sge, %103, %104 : vector<150x1xi32>
    %c100_i32_32 = arith.constant 100 : i32
    %106 = vector.broadcast %c100_i32_32 : i32 to vector<150x1xi32>
    %107 = arith.cmpi slt, %103, %106 : vector<150x1xi32>
    %108 = arith.andi %105, %107 : vector<150x1xi1>
    %cst_33 = arith.constant 0.000000e+00 : f32
    %109 = vector.broadcast %cst_33 : f32 to vector<150x32xf32>
    %110 = vector.shape_cast %108 : vector<150x1xi1> to vector<150x1xi1>
    %111 = vector.broadcast %110 : vector<150x1xi1> to vector<150x32xi1>
    %112 = arith.select %111, %98, %109 : vector<150x32xi1>, vector<150x32xf32>
    %c3 = arith.constant 3 : index
    %c0_34 = arith.constant 0 : index
    %c0_35 = arith.constant 0 : index
    %113 = vector.load %arg4[%c3, %c0_34, %c0_35] : memref<6x96x32xbf16, #tpu.memory_space<vmem>>, vector<1x96x32xbf16>
    %114 = vector.shape_cast %113 : vector<1x96x32xbf16> to vector<96x32xbf16>
    %115 = vector.extract_strided_slice %112 {offsets = [0, 0], sizes = [148, 32], strides = [1, 1]} : vector<150x32xf32> to vector<148x32xf32>
    %116 = arith.truncf %115 : vector<148x32xf32> to vector<148x32xbf16>
    %117 = vector.extract_strided_slice %112 {offsets = [1, 0], sizes = [148, 32], strides = [1, 1]} : vector<150x32xf32> to vector<148x32xf32>
    %118 = arith.truncf %117 : vector<148x32xf32> to vector<148x32xbf16>
    %119 = vector.extract_strided_slice %112 {offsets = [2, 0], sizes = [148, 32], strides = [1, 1]} : vector<150x32xf32> to vector<148x32xf32>
    %120 = arith.truncf %119 : vector<148x32xf32> to vector<148x32xbf16>
    %121 = tpu.concatenate %116, %118, %120 in 1 : vector<148x32xbf16>, vector<148x32xbf16>, vector<148x32xbf16> -> vector<148x96xbf16>
    %cst_36 = arith.constant dense<0.000000e+00> : vector<148x32xf32>
    %122 = tpu.matmul %121, %114, %cst_36 {dimension_numbers = #tpu.dot_dimension_numbers<[1], [0], [0], [1], [0, 0, 1, 1], [], []>} : vector<148x96xbf16>, vector<96x32xbf16>, vector<148x32xf32> -> vector<148x32xf32>
    %123 = vector.extract_strided_slice %65 {offsets = [4, 0], sizes = [148, 32], strides = [1, 1]} : vector<156x32xf32> to vector<148x32xf32>
    %124 = arith.addf %122, %123 : vector<148x32xf32>
    %cst_37 = arith.constant 0.000000e+00 : f32
    %125 = vector.broadcast %cst_37 : f32 to vector<148x32xf32>
    %126 = arith.cmpf ogt, %124, %125 : vector<148x32xf32>
    %cst_38 = arith.constant 2.000000e-01 : f32
    %127 = vector.broadcast %cst_38 : f32 to vector<148x32xf32>
    %128 = arith.mulf %127, %124 : vector<148x32xf32>
    %129 = arith.select %126, %124, %128 : vector<148x32xi1>, vector<148x32xf32>
    %c10_i32_39 = arith.constant 10 : i32
    %130 = arith.subi %0, %c10_i32_39 : i32
    %131 = tpu.iota {dimensions = array<i32: 0>} : vector<148x1xi32>
    %132 = vector.broadcast %130 : i32 to vector<148x1xi32>
    %133 = arith.addi %131, %132 : vector<148x1xi32>
    %c0_i32_40 = arith.constant 0 : i32
    %134 = vector.broadcast %c0_i32_40 : i32 to vector<148x1xi32>
    %135 = arith.cmpi sge, %133, %134 : vector<148x1xi32>
    %c100_i32_41 = arith.constant 100 : i32
    %136 = vector.broadcast %c100_i32_41 : i32 to vector<148x1xi32>
    %137 = arith.cmpi slt, %133, %136 : vector<148x1xi32>
    %138 = arith.andi %135, %137 : vector<148x1xi1>
    %cst_42 = arith.constant 0.000000e+00 : f32
    %139 = vector.broadcast %cst_42 : f32 to vector<148x32xf32>
    %140 = vector.shape_cast %138 : vector<148x1xi1> to vector<148x1xi1>
    %141 = vector.broadcast %140 : vector<148x1xi1> to vector<148x32xi1>
    %142 = arith.select %141, %129, %139 : vector<148x32xi1>, vector<148x32xf32>
    %c4 = arith.constant 4 : index
    %c0_43 = arith.constant 0 : index
    %c0_44 = arith.constant 0 : index
    %143 = vector.load %arg4[%c4, %c0_43, %c0_44] : memref<6x96x32xbf16, #tpu.memory_space<vmem>>, vector<1x96x32xbf16>
    %144 = vector.shape_cast %143 : vector<1x96x32xbf16> to vector<96x32xbf16>
    %145 = vector.extract_strided_slice %142 {offsets = [0, 0], sizes = [130, 32], strides = [1, 1]} : vector<148x32xf32> to vector<130x32xf32>
    %146 = arith.truncf %145 : vector<130x32xf32> to vector<130x32xbf16>
    %147 = vector.extract_strided_slice %142 {offsets = [9, 0], sizes = [130, 32], strides = [1, 1]} : vector<148x32xf32> to vector<130x32xf32>
    %148 = arith.truncf %147 : vector<130x32xf32> to vector<130x32xbf16>
    %149 = vector.extract_strided_slice %142 {offsets = [18, 0], sizes = [130, 32], strides = [1, 1]} : vector<148x32xf32> to vector<130x32xf32>
    %150 = arith.truncf %149 : vector<130x32xf32> to vector<130x32xbf16>
    %151 = tpu.concatenate %146, %148, %150 in 1 : vector<130x32xbf16>, vector<130x32xbf16>, vector<130x32xbf16> -> vector<130x96xbf16>
    %cst_45 = arith.constant dense<0.000000e+00> : vector<130x32xf32>
    %152 = tpu.matmul %151, %144, %cst_45 {dimension_numbers = #tpu.dot_dimension_numbers<[1], [0], [0], [1], [0, 0, 1, 1], [], []>} : vector<130x96xbf16>, vector<96x32xbf16>, vector<130x32xf32> -> vector<130x32xf32>
    %cst_46 = arith.constant 0.000000e+00 : f32
    %153 = vector.broadcast %cst_46 : f32 to vector<130x32xf32>
    %154 = arith.cmpf ogt, %152, %153 : vector<130x32xf32>
    %cst_47 = arith.constant 2.000000e-01 : f32
    %155 = vector.broadcast %cst_47 : f32 to vector<130x32xf32>
    %156 = arith.mulf %155, %152 : vector<130x32xf32>
    %157 = arith.select %154, %152, %156 : vector<130x32xi1>, vector<130x32xf32>
    %c0_i32_48 = arith.constant 0 : i32
    %158 = arith.subi %0, %c0_i32_48 : i32
    %c1_i32_49 = arith.constant 1 : i32
    %159 = arith.subi %158, %c1_i32_49 : i32
    %160 = tpu.iota {dimensions = array<i32: 0>} : vector<130x1xi32>
    %161 = vector.broadcast %159 : i32 to vector<130x1xi32>
    %162 = arith.addi %160, %161 : vector<130x1xi32>
    %c0_i32_50 = arith.constant 0 : i32
    %163 = vector.broadcast %c0_i32_50 : i32 to vector<130x1xi32>
    %164 = arith.cmpi sge, %162, %163 : vector<130x1xi32>
    %c100_i32_51 = arith.constant 100 : i32
    %165 = vector.broadcast %c100_i32_51 : i32 to vector<130x1xi32>
    %166 = arith.cmpi slt, %162, %165 : vector<130x1xi32>
    %167 = arith.andi %164, %166 : vector<130x1xi1>
    %cst_52 = arith.constant 0.000000e+00 : f32
    %168 = vector.broadcast %cst_52 : f32 to vector<130x32xf32>
    %169 = vector.shape_cast %167 : vector<130x1xi1> to vector<130x1xi1>
    %170 = vector.broadcast %169 : vector<130x1xi1> to vector<130x32xi1>
    %171 = arith.select %170, %157, %168 : vector<130x32xi1>, vector<130x32xf32>
    %c5 = arith.constant 5 : index
    %c0_53 = arith.constant 0 : index
    %c0_54 = arith.constant 0 : index
    %172 = vector.load %arg4[%c5, %c0_53, %c0_54] : memref<6x96x32xbf16, #tpu.memory_space<vmem>>, vector<1x96x32xbf16>
    %173 = vector.shape_cast %172 : vector<1x96x32xbf16> to vector<96x32xbf16>
    %174 = vector.extract_strided_slice %171 {offsets = [0, 0], sizes = [128, 32], strides = [1, 1]} : vector<130x32xf32> to vector<128x32xf32>
    %175 = arith.truncf %174 : vector<128x32xf32> to vector<128x32xbf16>
    %176 = vector.extract_strided_slice %171 {offsets = [1, 0], sizes = [128, 32], strides = [1, 1]} : vector<130x32xf32> to vector<128x32xf32>
    %177 = arith.truncf %176 : vector<128x32xf32> to vector<128x32xbf16>
    %178 = vector.extract_strided_slice %171 {offsets = [2, 0], sizes = [128, 32], strides = [1, 1]} : vector<130x32xf32> to vector<128x32xf32>
    %179 = arith.truncf %178 : vector<128x32xf32> to vector<128x32xbf16>
    %180 = tpu.concatenate %175, %177, %179 in 1 : vector<128x32xbf16>, vector<128x32xbf16>, vector<128x32xbf16> -> vector<128x96xbf16>
    %cst_55 = arith.constant dense<0.000000e+00> : vector<128x32xf32>
    %181 = tpu.matmul %180, %173, %cst_55 {dimension_numbers = #tpu.dot_dimension_numbers<[1], [0], [0], [1], [0, 0, 1, 1], [], []>} : vector<128x96xbf16>, vector<96x32xbf16>, vector<128x32xf32> -> vector<128x32xf32>
    %182 = vector.extract_strided_slice %124 {offsets = [10, 0], sizes = [128, 32], strides = [1, 1]} : vector<148x32xf32> to vector<128x32xf32>
    %183 = arith.addf %181, %182 : vector<128x32xf32>
    %184 = arith.truncf %183 : vector<128x32xf32> to vector<128x32xbf16>
    %c0_56 = arith.constant 0 : index
    %c0_57 = arith.constant 0 : index
    %c0_58 = arith.constant 0 : index
    %185 = vector.load %arg5[%c0_56, %c0_57, %c0_58] : memref<1x128x32xbf16, #tpu.memory_space<vmem>>, vector<1x128x32xbf16>
    %186 = vector.shape_cast %185 : vector<1x128x32xbf16> to vector<128x32xbf16>
    %187 = vector.shape_cast %184 : vector<128x32xbf16> to vector<1x128x32xbf16>
    tpu.vector_store %arg5[%c0_56, %c0_57, %c0_58], %187 {strides = array<i32>} : memref<1x128x32xbf16, #tpu.memory_space<vmem>>, vector<1x128x32xbf16>,
    return
  }
  func.func @transform_0(%arg0: i32, %arg1: i32) -> (i32, i32, i32) {
    %c0_i32 = arith.constant 0 : i32
    %c0_i32_0 = arith.constant 0 : i32
    return %arg0, %arg1, %c0_i32 : i32, i32, i32
  }
  func.func @transform_1(%arg0: i32, %arg1: i32) -> (i32, i32, i32) {
    %c1_i32 = arith.constant 1 : i32
    %0 = arith.addi %arg1, %c1_i32 : i32
    %c4_i32 = arith.constant 4 : i32
    %1 = arith.muli %0, %c4_i32 : i32
    %c0_i32 = arith.constant 0 : i32
    %c0_i32_0 = arith.constant 0 : i32
    return %arg0, %1, %c0_i32 : i32, i32, i32
  }
  func.func @transform_2(%arg0: i32, %arg1: i32) -> (i32, i32, i32) {
    %c0_i32 = arith.constant 0 : i32
    %c0_i32_0 = arith.constant 0 : i32
    %c0_i32_1 = arith.constant 0 : i32
    %c0_i32_2 = arith.constant 0 : i32
    return %c0_i32, %c0_i32_0, %c0_i32_1 : i32, i32, i32
  }
  func.func @transform_3(%arg0: i32, %arg1: i32) -> (i32, i32, i32) {
    %c0_i32 = arith.constant 0 : i32
    %c0_i32_0 = arith.constant 0 : i32
    return %arg0, %arg1, %c0_i32 : i32, i32, i32
  }
}

</mosaic_0001>

<bundles_post_ra>
// kernel: residual_stack_forward.1
= control target key start
LH: loop header
LB: loop body
LE: loop exit
PB: predicated region body
PF: predicated region fallthrough
CT: control target
= control target key end

     0   :  { %s4874_s12 = smov 0   ;;  %s4876_s13 = smov 0   ;;  %s6248_s0 = inlined_call_operand.vmem [shape: bf16[2,160,32], index: 0, kind: input, shape index: {}, may-alias: {0,1}]   ;;  %s6249_s1 = inlined_call_operand.vmem [shape: bf16[2,160,32], index: 1, kind: input, shape index: {}, may-alias: {0,1}]   ;;  %s6250_s2 = inlined_call_operand.vmem [shape: bf16[6,96,32], index: 2, kind: input, shape index: {}]   ;;  %s6251_s3 = inlined_call_operand.vmem [shape: bf16[2,128,32], index: 3, kind: output, shape index: {}]  }
   0x1   :  { %s4878_s14 = smov 0  }
   0x2 LB: > { %s25_s15 = sadd.s32 1, %s4842_s13  ;;  %p4211_p0 = scmp.ge.s32.totalorder %s4846_s14, 1  ;;  %s4846_s14 = sphi %s4878_s14, %s13_s14   ;;  %s4842_s13 = sphi %s4876_s13, %s6253_s13   ;;  %s4838_s12 = sphi %s4874_s12, %s6252_s12  }
   0x3   : > { %p27_p1 = scmp.ge.s32.totalorder %s25_s15, 2  ;;  %p191_p2 = scmp.lt.s32.totalorder %s4846_s14, 3 }
   0x5   : > { %s6255_s15 = smov (%p27_p1, %s25_s15), 0  ;;  %p192_p3 = pnand %p4211_p0, %p191_p2 }
   0x6   : > { %p243_p4 = scmp.lt.s32.totalorder (!%p192_p3), %s4838_s12, 1  ;;  %v443_v0 = vlaneseq (!%p192_p3)  ;;  %v4785_v2 = vld [vmem:[%s6250_s2] sm:$0xff] (!%p192_p3)   ;;  %v4786_v3 = vld [vmem:[%s6250_s2 + $0x8] sm:$0xff] (!%p192_p3)   ;;  %v4787_v5 = vld [vmem:[%s6250_s2 + $0x10] sm:$0xff] (!%p192_p3)   ;;  %vm737_vm0 = vcmask (!%p192_p3), 1046528   ;;  %v4848_v7 = vmov (!%p192_p3), 0.0|0.0  }
   0x7   : > { %195 = sbr.rel (%p192_p3) target bundleno = 2186 (0x88a), region = 32  ;;  %4509 = vmatprep.subr.bf16.mxu0 (!%p192_p3), %v4785_v2  ;;  %4713 = vmatprep.subr.bf16.mxu1 (!%p192_p3), %v4785_v2  ;;  %v4918_v8 = vrot.slane (!%p192_p3), %v4848_v7, 1  ;;  %v4788_v10 = vld [vmem:[%s6250_s2 + $0x18] sm:$0xff] (!%p192_p3)   ;;  %vm627_vm1 = vsmask.f32 (!%p192_p3), 7424  ;;  %v4849_v13 = vmov (!%p192_p3), 0  }
   0x8   : > { %v4894_v1 = vshrl.u32 (!%p192_p3), %v443_v0, 7  ;;  %4510 = vmatpush3.bf16.msra.mxu0 (!%p192_p3), %v4785_v2  ;;  %4719 = vmatpush3.bf16.msra.mxu1 (!%p192_p3), %v4785_v2  ;;  %v4929_v14 = vrot.slane (!%p192_p3), %v4849_v13, 1  ;;  %v4789_v38 = vld [vmem:[%s6250_s2 + $0x20] sm:$0xff] (!%p192_p3)   ;;  %v4790_v47 = vld [vmem:[%s6250_s2 + $0x28] sm:$0xff] (!%p192_p3)   ;;  %s4850_s5 = smov (!%p192_p3), 64   ;;  %s4851_s6 = smov (!%p192_p3), 32  }
   0x9   : > { %4511 = vmatprep.subr.bf16.mxu0 (!%p192_p3), %v4786_v3  ;;  %4714 = vmatprep.subr.bf16.mxu1 (!%p192_p3), %v4786_v3 }
   0xa   : > { %v4911_v4 = vadd.s32 (!%p192_p3), 112, %v4894_v1 }
   0xc   : > { %4512 = vmatpush3.bf16.msra.mxu0 (!%p192_p3), %v4786_v3  ;;  %4720 = vmatpush3.bf16.msra.mxu1 (!%p192_p3), %v4786_v3  ;;  %v4938_v19 = vadd.s32 (!%p192_p3), 4294967280, %v4911_v4 }
   0xd   : > { %4513 = vmatprep.subr.bf16.mxu0 (!%p192_p3), %v4787_v5  ;;  %4715 = vmatprep.subr.bf16.mxu1 (!%p192_p3), %v4787_v5 }
   0xe   : > { %s6257_s12 = smov (!%p243_p4, %s4838_s12), 1  ;;  %vm519_vm10 = vcmp.lt.s32.totalorder %v4938_v19, 100 }
   0xf   : > { %s4725_s20 = smul.u32 80, %s6257_s12 }
  0x10   : > { %4514 = vmatpush3.bf16.msra.mxu0 %v4787_v5  ;;  %4721 = vmatpush3.bf16.msra.mxu1 %v4787_v5 }
  0x11   : > { %s4908_s23 = scalar_lea.vmem %s6248_s0, %s4725_s20  ;;  %4515 = vmatprep.subr.bf16.mxu0 %v4788_v10  ;;  %4716 = vmatprep.subr.bf16.mxu1 %v4788_v10  ;;  %s4398_s25 = sadd.s32 64, %s4725_s20 }
  0x12   : > { %v4778_v6 = vld [vmem:[%s4908_s23 + $0x8] sm:$0xff]   ;;  %v4779_v9 = vld [vmem:[%s4908_s23 + $0x10] sm:$0xff]   ;;  %v4780_v17 = vld [vmem:[%s4908_s23 + $0x18] sm:$0xff]   ;;  %s5279_s28 = scalar_lea.vmem %s6249_s1, %s4398_s25 }
  0x13   : > { %v4924_v11 = vunpack.c.l.bf16 %v4778_v6  ;;  %v4926_v12 = vunpack.c.h.bf16 %v4778_v6  ;;  %v4931_v15 = vunpack.c.l.bf16 %v4779_v9  ;;  %v4933_v16 = vunpack.c.h.bf16 %v4779_v9  ;;  %v4781_v18 = vld [vmem:[%s4908_s23 + $0x20] sm:$0xff]   ;;  %v4782_v37 = vld [vmem:[%s4908_s23 + $0x28] sm:$0xff]   ;;  %v4783_v42 = vld [vmem:[%s4908_s23 + $0x30] sm:$0xff]  }
  0x14   : > { %v4950_v26 = vunpack.c.l.bf16 %v4780_v17  ;;  %v4952_v27 = vunpack.c.h.bf16 %v4780_v17  ;;  %v4958_v31 = vunpack.c.l.bf16 %v4781_v18  ;;  %v4962_v33 = vunpack.c.h.bf16 %v4781_v18  ;;  %4516 = vmatpush3.bf16.msra.mxu0 %v4788_v10  ;;  %4722 = vmatpush3.bf16.msra.mxu1 %v4788_v10  ;;  %v5028_v17 = vld [vmem:[%s4908_s23 + $0x38] sm:$0xff]  }
  0x15   : > { %vm384_vm2 = vcmp.gt.f32.partialorder %v4924_v11, 0.0  ;;  %vm385_vm3 = vcmp.gt.f32.partialorder %v4926_v12, 0.0  ;;  %v404_v20 = vmul.f32 0.2, %v4924_v11  ;;  %v405_v21 = vmul.f32 0.2, %v4926_v12  ;;  %4517 = vmatprep.subr.bf16.mxu0 %v4789_v38  ;;  %4717 = vmatprep.subr.bf16.mxu1 %v4789_v38 }
  0x16   : > { %vm386_vm4 = vcmp.gt.f32.partialorder %v4931_v15, 0.0  ;;  %vm387_vm5 = vcmp.gt.f32.partialorder %v4933_v16, 0.0  ;;  %v406_v22 = vmul.f32 0.2, %v4931_v15  ;;  %v407_v23 = vmul.f32 0.2, %v4933_v16 }
  0x17   : > { %v424_v24 = vsel %vm384_vm2, %v4924_v11, %v404_v20  ;;  %v425_v25 = vsel %vm385_vm3, %v4926_v12, %v405_v21  ;;  %vm388_vm6 = vcmp.gt.f32.partialorder %v4950_v26, 0.0  ;;  %vm389_vm7 = vcmp.gt.f32.partialorder %v4952_v27, 0.0 }
  0x18   : > { %v4954_v28 = vpack.c.bf16 %v425_v25, %v424_v24  ;;  %v426_v29 = vsel %vm386_vm4, %v4931_v15, %v406_v22  ;;  %v427_v30 = vsel %vm387_vm5, %v4933_v16, %v407_v23  ;;  %vm390_vm8 = vcmp.gt.f32.partialorder %v4958_v31, 0.0  ;;  %4518 = vmatpush3.bf16.msra.mxu0 %v4789_v38  ;;  %4723 = vmatpush3.bf16.msra.mxu1 %v4789_v38 }
  0x19   : > { %v4960_v32 = vpack.c.bf16 %v427_v30, %v426_v29  ;;  %vm391_vm9 = vcmp.gt.f32.partialorder %v4962_v33, 0.0  ;;  %v408_v41 = vmul.f32 0.2, %v4950_v26  ;;  %v409_v45 = vmul.f32 0.2, %v4952_v27  ;;  %4519 = vmatprep.subr.bf16.mxu0 %v4790_v47  ;;  %4718 = vmatprep.subr.bf16.mxu1 %v4790_v47 }
  0x1a   : > { %v739_v34 = vrot.slane %v4954_v28, 1  ;;  %v636_v35 = vshll.u32 %v4954_v28, 16  ;;  %v640_v36 = vshrl.u32 %v4954_v28, 16  ;;  %v410_v46 = vmul.f32 0.2, %v4958_v31 }
  0x1b   : > { %v741_v39 = vrot.slane %v4960_v32, 1  ;;  %v644_v40 = vshll.u32 %v4960_v32, 16  ;;  %v411_v50 = vmul.f32 0.2, %v4962_v33  ;;  %v428_v51 = vsel %vm388_vm6, %v4950_v26, %v408_v41 }
  0x1c   : > { %v740_v43 = vsel %vm737_vm0, %v4918_v8, %v739_v34  ;;  %v638_v44 = vrot.slane %v636_v35, 1  ;;  %v429_v54 = vsel %vm389_vm7, %v4952_v27, %v409_v45  ;;  %v430_v55 = vsel %vm390_vm8, %v4958_v31, %v410_v46  ;;  %4520 = vmatpush3.bf16.msra.mxu0 %v4790_v47  ;;  %4724 = vmatpush3.bf16.msra.mxu1 %v4790_v47 }
  0x1d   : > { %757 = vrot.lane.b32.xlu1 %v740_v43, %s4850_s5  ;;  %v742_v48 = vsel %vm737_vm0, %v739_v34, %v741_v39  ;;  %v646_v49 = vrot.slane %v644_v40, 1  ;;  %v431_v56 = vsel %vm391_vm9, %v4962_v33, %v411_v50  ;;  %v5006_v57 = vpack.c.bf16 %v429_v54, %v428_v51 }
  0x1e   : > { %v639_v52 = vsel %vm627_vm1, %v4929_v14, %v638_v44  ;;  %v642_v53 = vor.u32 %v640_v36, %v638_v44  ;;  %v648_v58 = vshrl.u32 %v4960_v32, 16  ;;  %v5009_v59 = vunpack.c.l.bf16 %v4782_v37 }
  0x1f   : > { %707 = vrot.lane.b32.xlu0 %v639_v52, %s4851_s6  ;;  %v5012_v61 = vpack.c.bf16 %v431_v56, %v430_v55  ;;  %v5014_v62 = vunpack.c.h.bf16 %v4782_v37  ;;  %v5016_v63 = vunpack.c.l.bf16 %v4783_v42  ;;  %v652_v0 = vshll.u32 %v5006_v57, 16 }
  0x20   : > { %v647_v60 = vsel %vm627_vm1, %v642_v53, %v646_v49  ;;  %v656_v2 = vshrl.u32 %v5006_v57, 16  ;;  %v650_v3 = vor.u32 %v648_v58, %v646_v49  ;;  %v743_v6 = vrot.slane %v5006_v57, 1 }
  0x21   : > { %759 = vrot.lane.b32.xlu1 %v742_v48, %s4850_s5  ;;  %v660_v5 = vshll.u32 %v5012_v61, 16  ;;  %v745_v9 = vrot.slane %v5012_v61, 1  ;;  %v5025_v10 = vunpack.c.h.bf16 %v4783_v42  ;;  %v654_v18 = vrot.slane %v652_v0, 1 }
  0x22   : > { %vm392_vm11 = vcmp.gt.f32.partialorder %v5009_v59, 0.0  ;;  %vm393_vm12 = vcmp.gt.f32.partialorder %v5014_v62, 0.0  ;;  %vm394_vm13 = vcmp.gt.f32.partialorder %v5016_v63, 0.0  ;;  %v412_v21 = vmul.f32 0.2, %v5009_v59 }
  0x23   : > { %709 = vrot.lane.b32.xlu0 %v647_v60, %s4851_s6  ;;  %v662_v20 = vrot.slane %v660_v5, 1  ;;  %vm395_vm14 = vcmp.gt.f32.partialorder %v5025_v10, 0.0  ;;  %v658_v22 = vor.u32 %v656_v2, %v654_v18  ;;  %v655_v23 = vsel %vm627_vm1, %v650_v3, %v654_v18 }
  0x24   : > { %v413_v24 = vmul.f32 0.2, %v5014_v62  ;;  %v414_v25 = vmul.f32 0.2, %v5016_v63  ;;  %v415_v29 = vmul.f32 0.2, %v5025_v10  ;;  %v432_v30 = vsel %vm392_vm11, %v5009_v59, %v412_v21 }
  0x25   : > { %v664_v34 = vshrl.u32 %v5012_v61, 16  ;;  %v5043_v35 = vunpack.c.l.bf16 %v5028_v17  ;;  %v663_v36 = vsel %vm627_vm1, %v658_v22, %v662_v20  ;;  %v744_v40 = vsel %vm737_vm0, %v741_v39, %v743_v6 }
  0x26   : > { %v433_v37 = vsel %vm393_vm12, %v5014_v62, %v413_v24  ;;  %v434_v38 = vsel %vm394_vm13, %v5016_v63, %v414_v25  ;;  %713 = vrot.lane.b32.xlu1 %v663_v36, %s4851_s6  ;;  %v435_v41 = vsel %vm395_vm14, %v5025_v10, %v415_v29  ;;  %v746_v43 = vsel %vm737_vm0, %v743_v6, %v745_v9 }
  0x27   : > { %711 = vrot.lane.b32.xlu0 %v655_v23, %s4851_s6  ;;  %v5060_v42 = vpack.c.bf16 %v433_v37, %v432_v30  ;;  %vm396_vm15 = vcmp.gt.f32.partialorder %v5043_v35, 0.0  ;;  %v5064_v44 = vpack.c.bf16 %v435_v41, %v434_v38  ;;  %v416_v45 = vmul.f32 0.2, %v5043_v35 }
  0x28   : > { %v666_v48 = vor.u32 %v664_v34, %v662_v20  ;;  %v4852_v56 = vmov 0.0   ;;  %vm777_vm2 = vcmask 261120   ;;  %vm798_vm3 = vcmask 523264  }
  0x29   : > { %v668_v46 = vshll.u32 %v5060_v42, 16  ;;  %v672_v47 = vshrl.u32 %v5060_v42, 16  ;;  %v676_v39 = vshll.u32 %v5064_v44, 16  ;;  %v747_v49 = vrot.slane %v5060_v42, 1 }
  0x2a   : > { %v436_v50 = vsel %vm396_vm15, %v5043_v35, %v416_v45  ;;  %v680_v51 = vshrl.u32 %v5064_v44, 16  ;;  %763 = vrot.lane.b32.xlu1 %v746_v43, %s4850_s5  ;;  %v749_v55 = vrot.slane %v5064_v44, 1  ;;  %vm855_vm4 = vcmask 785408  }
  0x2b   : > { %761 = vrot.lane.b32.xlu0 %v744_v40, %s4850_s5  ;;  %v670_v52 = vrot.slane %v668_v46, 1  ;;  %v599_v53 = vsel %vm519_vm10, %v436_v50, 0.0  ;;  %v678_v54 = vrot.slane %v676_v39, 1  ;;  %v748_v6 = vsel %vm737_vm0, %v745_v9, %v747_v49 }
  0x2c   : > { %v624_v58 = vpack.c.bf16 %v4852_v56, %v599_v53  ;;  %v750_v21 = vsel %vm737_vm0, %v747_v49, %v749_v55 }
  0x2d   : > { %v674_v60 = vor.u32 %v672_v47, %v670_v52  ;;  %v671_v0 = vsel %vm627_vm1, %v666_v48, %v670_v52  ;;  %v682_v18 = vor.u32 %v680_v51, %v678_v54 }
  0x2e   : > { %v684_v2 = vshll.u32 %v624_v58, 16  ;;  %v688_v3 = vshrl.u32 %v624_v58, 16  ;;  %v751_v20 = vrot.slane %v624_v58, 1 }
  0x2f   : > { %715 = vrot.lane.b32.xlu0 %v671_v0, %s4851_s6  ;;  %v679_v5 = vsel %vm627_vm1, %v674_v60, %v678_v54 }
  0x30   : > { %717 = vrot.lane.b32.xlu1 %v679_v5, %s4851_s6  ;;  %v686_v19 = vrot.slane %v684_v2, 1  ;;  %v752_v9 = vsel %vm737_vm0, %v749_v55, %v751_v20  ;;  %v754_v25 = vsel %vm737_vm0, %v751_v20, %v4918_v8  ;;  %v4794_v20 = vld [vmem:[%s6250_s2 + $0x48] sm:$0xff]  }
  0x32   : > { %v690_v22 = vor.u32 %v688_v3, %v686_v19  ;;  %v687_v23 = vsel %vm627_vm1, %v682_v18, %v686_v19  ;;  %v5131_v18 = vpack.i.bf16 %v4929_v14, %v4929_v14  ;;  %v4793_v19 = vld [vmem:[%s6250_s2 + $0x40] sm:$0xff]  }
  0x33   : > { %765 = vrot.lane.b32.xlu0 %v748_v6, %s4850_s5 }
  0x34   : > { %767 = vrot.lane.b32.xlu1 %v750_v21, %s4850_s5  ;;  %v695_v24 = vsel %vm627_vm1, %v690_v22, %v4929_v14  ;;  %v5150_v21 = vadd.s32 8, %v4894_v1 }
  0x37   : > { %719 = vrot.lane.b32.xlu0 %v687_v23, %s4851_s6  ;;  %v1052_v23 = vadd.s32 4294967281, %v5150_v21 }
  0x38   : > { %721 = vrot.lane.b32.xlu1 %v695_v24, %s4851_s6 }
  0x39   : > { %vm1072_vm8 = vcmp.ge.s32.totalorder %v1052_v23, 0 }
  0x3b   : > { %769 = vrot.lane.b32.xlu0 %v752_v9, %s4850_s5 }
  0x3c   : > { %771 = vrot.lane.b32.xlu1 %v754_v25, %s4850_s5 }
  0x3f   : > { %4759 = vrot.lane.b32.xlu0 %v5131_v18, %s4851_s6 }
  0x40   : > { %773 = vrot.lane.b32.xlu1 %v4918_v8, %s4850_s5 }
  0x43   : > { %775 = vrot.lane.b32.xlu0 %v4918_v8, %s4850_s5 }
  0x8f   : > { %v758_v29 = vpop.permute.xlu1 %757 }
  0x91   : > { %v708_v30 = vpop.permute.xlu0 %707 }
  0x92   : > { %v779_v34 = vsel %vm777_vm2, 0.0|0.0, %v708_v30 }
  0x93   : > { %v800_v36 = vsel %vm798_vm3, %v779_v34, %v758_v29  ;;  %v760_v37 = vpop.permute.xlu1 %759 }
  0x94   : > { %4521 = vmatprep.mubr.msk.bf16.mxu0 %vm855_vm4, %v800_v36 }
  0x95   : > { %v710_v38 = vpop.permute.xlu0 %709 }
  0x96   : > { %v781_v40 = vsel %vm777_vm2, %v4954_v28, %v710_v38 }
  0x97   : > { %v802_v41 = vsel %vm798_vm3, %v781_v40, %v760_v37 }
  0x98   : > { %4522 = vmatmul.mubr.msk.bf16.vlgmr.msra.gmra.mrb[0].mxu0 %vm855_vm4, %v802_v41  ;;  %v714_v45 = vpop.permute.xlu1 %713 }
  0x99   : > { %v712_v43 = vpop.permute.xlu0 %711  ;;  %v785_v46 = vsel %vm777_vm2, %v5006_v57, %v714_v45 }
  0x9a   : > { %v783_v47 = vsel %vm777_vm2, %v4960_v32, %v712_v43 }
  0x9c   : > { %v764_v39 = vpop.permute.xlu1 %763 }
  0x9d   : > { %v762_v48 = vpop.permute.xlu0 %761  ;;  %v806_v50 = vsel %vm798_vm3, %v785_v46, %v764_v39  ;;  %v4795_v46 = vld [vmem:[%s6250_s2 + $0x50] sm:$0xff]  }
  0x9e   : > { %v804_v49 = vsel %vm798_vm3, %v783_v47, %v762_v48 }
  0x9f   : > { %4525 = vmatprep.mubr.msk.bf16.mxu0 %vm855_vm4, %v804_v49 }
  0xa0   : > { %4526 = vmatmul.mubr.msk.bf16.gmra.mrb[4].mxu0 %vm855_vm4, %v806_v50 }
  0xa1   : > { %v716_v28 = vpop.permute.xlu0 %715 }
  0xa2   : > { %v718_v51 = vpop.permute.xlu1 %717  ;;  %v787_v57 = vsel %vm777_vm2, %v5012_v61, %v716_v28 }
  0xa3   : > { %v789_v52 = vsel %vm777_vm2, %v5060_v42, %v718_v51 }
  0xa5   : > { %v766_v53 = vpop.permute.xlu0 %765 }
  0xa6   : > { %v808_v32 = vsel %vm798_vm3, %v787_v57, %v766_v53  ;;  %v768_v54 = vpop.permute.xlu1 %767 }
  0xa7   : > { %4529 = vmatprep.mubr.msk.bf16.mxu0 %vm855_vm4, %v808_v32  ;;  %v810_v55 = vsel %vm798_vm3, %v789_v52, %v768_v54 }
  0xa8   : > { %4530 = vmatmul.mubr.msk.bf16.gmra.mrb[8].mxu0 %vm855_vm4, %v810_v55  ;;  %v4796_v55 = vld [vmem:[%s6250_s2 + $0x58] sm:$0xff]  }
  0xa9   : > { %v720_v60 = vpop.permute.xlu0 %719 }
  0xaa   : > { %v722_v0 = vpop.permute.xlu1 %721  ;;  %v791_v42 = vsel %vm777_vm2, %v5064_v44, %v720_v60  ;;  %v4791_v44 = vld [vmem:[%s6250_s2 + $0x30] sm:$0xff]  }
  0xab   : > { %v793_v2 = vsel %vm777_vm2, %v624_v58, %v722_v0  ;;  %v4792_v58 = vld [vmem:[%s6250_s2 + $0x38] sm:$0xff]   ;;  %4541 = vmatprep.subr.bf16.mxu1 %v4791_v44 }
  0xad   : > { %v770_v3 = vpop.permute.xlu0 %769 }
  0xae   : > { %v812_v61 = vsel %vm798_vm3, %v791_v42, %v770_v3  ;;  %v772_v5 = vpop.permute.xlu1 %771 }
  0xaf   : > { %4533 = vmatprep.mubr.msk.bf16.mxu1 %vm855_vm4, %v812_v61  ;;  %v814_v6 = vsel %vm798_vm3, %v793_v2, %v772_v5 }
  0xb0   : > { %4534 = vmatmul.mubr.msk.bf16.vlgmr.msra.gmra.mrb[0].mxu1 %vm855_vm4, %v814_v6 }
  0xb1   : > { %4542 = vmatpush3.bf16.msra.mxu1 %v4791_v44  ;;  %v4760_v24 = vpop.permute.xlu0 %4759 }
  0xb2   : > { %4543 = vmatprep.subr.bf16.mxu1 %v4792_v58  ;;  %v4762_v29 = vunpack.i.h.bf16 %v4760_v24  ;;  %v4761_v30 = vunpack.i.l.bf16 %v4760_v24  ;;  %v774_v36 = vpop.permute.xlu1 %773 }
  0xb4   : > { %v797_v40 = vsel %vm777_vm2, 0.0|0.0, %v4762_v29  ;;  %v795_v43 = vsel %vm777_vm2, 0.0|0.0, %v4761_v30 }
  0xb5   : > { %4544 = vmatpush3.bf16.msra.mxu1 %v4792_v58  ;;  %v776_v45 = vpop.permute.xlu0 %775  ;;  %v816_v39 = vsel %vm798_vm3, %v795_v43, %v774_v36  ;;  %v1065_v43 = vadd.s32 4294967281, %v4911_v4 }
  0xb6   : > { %4545 = vmatprep.subr.bf16.mxu1 %v4793_v19  ;;  %v818_v49 = vsel %vm798_vm3, %v797_v40, %v776_v45  ;;  %4537 = vmatprep.mubr.msk.bf16.mxu1 %vm855_vm4, %v816_v39 }
  0xb8   : > { %4538 = vmatmul.mubr.msk.bf16.gmra.mrb[4].mxu1 %vm855_vm4, %v818_v49 }
  0xb9   : > { %4546 = vmatpush3.bf16.msra.mxu1 %v4793_v19 }
  0xba   : > { %4547 = vmatprep.subr.bf16.mxu1 %v4794_v20 }
  0xbd   : > { %4548 = vmatpush3.bf16.msra.mxu1 %v4794_v20 }
  0xbe   : > { %4549 = vmatprep.subr.bf16.mxu1 %v4795_v46 }
  0xc1   : > { %4550 = vmatpush3.bf16.msra.mxu1 %v4795_v46 }
  0xc2   : > { %4551 = vmatprep.subr.bf16.mxu1 %v4796_v55 }
  0xc5   : > { %4552 = vmatpush3.bf16.msra.mxu1 %v4796_v55 }
 0x16b   : > { %v4523_v22 = vpop.f32.mrb[0].mxu0 }
 0x16c   : > { %v1011_v9 = vmul.f32 0.2, %v4523_v22  ;;  %v910_v25 = vpop.f32.mrb[1].mxu0  ;;  %vm991_vm5 = vcmp.gt.f32.partialorder %v4523_v22, 0.0 }
 0x16d   : > { %v4524_v34 = vpop.f32.mrb[2].mxu0 }
 0x16e   : > { %vm992_vm6 = vcmp.gt.f32.partialorder %v4524_v34, 0.0  ;;  %v1012_v37 = vmul.f32 0.2, %v4524_v34  ;;  %v913_v38 = vpop.f32.mrb[3].mxu0  ;;  %v1031_v47 = vsel %vm991_vm5, %v4523_v22, %v1011_v9 }
 0x16f   : > { %vm990_vm7 = vcmp.gt.f32.partialorder %v913_v38, 0.0  ;;  %v1010_v41 = vmul.f32 0.2, %v913_v38 }
 0x170   : > { %v1032_v48 = vsel %vm992_vm6, %v4524_v34, %v1012_v37 }
 0x171   : > { %v5160_v50 = vpack.c.bf16 %v1032_v48, %v1031_v47  ;;  %v1030_v28 = vsel %vm990_vm7, %v913_v38, %v1010_v41  ;;  %vm1105_vm7 = vcmp.lt.s32.totalorder %v1065_v43, 100 }
 0x172   : > { %v1172_v51 = vsel %vm1072_vm8, %v1030_v28, 0.0 }
 0x173   : > { %v5165_v52 = vpack.c.bf16 %v1172_v51, %v4852_v56  ;;  %v4527_v57 = vpop.f32.mrb[4].mxu0  ;;  %v1222_v54 = vshll.u32 %v5160_v50, 16  ;;  %v1226_v30 = vshrl.u32 %v5160_v50, 16  ;;  %v1324_v36 = vrot.slane %v5160_v50, 1 }
 0x174   : > { %v1015_v53 = vmul.f32 0.2, %v4527_v57  ;;  %v926_v32 = vpop.f32.mrb[5].mxu0  ;;  %vm995_vm9 = vcmp.gt.f32.partialorder %v4527_v57, 0.0 }
 0x175   : > { %v1013_v60 = vmul.f32 0.2, %v926_v32  ;;  %v4528_v0 = vpop.f32.mrb[6].mxu0  ;;  %v1217_v2 = vshll.u32 %v5165_v52, 16  ;;  %vm993_vm10 = vcmp.gt.f32.partialorder %v926_v32, 0.0  ;;  %v1215_v5 = vshrl.u32 %v5165_v52, 16 }
 0x176   : > { %vm996_vm11 = vcmp.gt.f32.partialorder %v4528_v0, 0.0  ;;  %v1016_v42 = vmul.f32 0.2, %v4528_v0  ;;  %v929_v3 = vpop.f32.mrb[7].mxu0  ;;  %v1035_v44 = vsel %vm995_vm9, %v4527_v57, %v1015_v53  ;;  %v1224_v19 = vrot.slane %v1222_v54, 1 }
 0x177   : > { %vm994_vm12 = vcmp.gt.f32.partialorder %v929_v3, 0.0  ;;  %v1014_v61 = vmul.f32 0.2, %v929_v3  ;;  %v1219_v6 = vrot.slane %v1217_v2, 1  ;;  %v1033_v20 = vsel %vm993_vm10, %v926_v32, %v1013_v60 }
 0x178   : > { %v1036_v58 = vsel %vm996_vm11, %v4528_v0, %v1016_v42  ;;  %v1323_v25 = vrot.slane %v5165_v52, 1  ;;  %v1228_v41 = vor.u32 %v1226_v30, %v1224_v19  ;;  %vm1458_vm10 = vcmask 1045504  }
 0x179   : > { %v5173_v22 = vpack.c.bf16 %v1036_v58, %v1035_v44  ;;  %v1034_v23 = vsel %vm994_vm12, %v929_v3, %v1014_v61  ;;  %v1220_v24 = vor.u32 %v1219_v6, %v1215_v5  ;;  %vm2704_vm12 = vcmask 1043456  }
 0x17a   : > { %v5175_v9 = vpack.c.bf16 %v1034_v23, %v1033_v20  ;;  %v1325_v48 = vsel %vm737_vm0, %v1323_v25, %v1324_v36 }
 0x17b   : > { %v1225_v29 = vsel %vm627_vm1, %v1220_v24, %v1224_v19  ;;  %v4531_v34 = vpop.f32.mrb[8].mxu0  ;;  %v1238_v45 = vshll.u32 %v5173_v22, 16  ;;  %v1328_v61 = vrot.slane %v5173_v22, 1  ;;  %v1242_v19 = vshrl.u32 %v5173_v22, 16 }
 0x17c   : > { %1293 = vrot.lane.b32.xlu1 %v1225_v29, %s4851_s6  ;;  %v1230_v37 = vshll.u32 %v5175_v9, 16  ;;  %v1019_v38 = vmul.f32 0.2, %v4531_v34  ;;  %v942_v40 = vpop.f32.mrb[9].mxu0  ;;  %vm999_vm13 = vcmp.gt.f32.partialorder %v4531_v34, 0.0  ;;  %v1234_v51 = vshrl.u32 %v5175_v9, 16 }
 0x17d   : > { %v1017_v46 = vmul.f32 0.2, %v942_v40  ;;  %v4532_v47 = vpop.f32.mrb[10].mxu0  ;;  %vm997_vm14 = vcmp.gt.f32.partialorder %v942_v40, 0.0  ;;  %v1326_v32 = vrot.slane %v5175_v9, 1  ;;  %v1240_v0 = vrot.slane %v1238_v45, 1 }
 0x17e   : > { %v1232_v39 = vrot.slane %v1230_v37, 1  ;;  %vm1000_vm15 = vcmp.gt.f32.partialorder %v4532_v47, 0.0  ;;  %v1020_v49 = vmul.f32 0.2, %v4532_v47  ;;  %v945_v28 = vpop.f32.mrb[11].mxu0  ;;  %v1039_v54 = vsel %vm999_vm13, %v4531_v34, %v1019_v38 }
 0x17f   : > { %vm998_vm5 = vcmp.gt.f32.partialorder %v945_v28, 0.0  ;;  %v1018_v57 = vmul.f32 0.2, %v945_v28  ;;  %v1037_v2 = vsel %vm997_vm14, %v942_v40, %v1017_v46  ;;  %v1327_v58 = vsel %vm737_vm0, %v1324_v36, %v1326_v32 }
 0x180   : > { %1342 = vrot.lane.b32.xlu1 %v1325_v48, %s4850_s5  ;;  %v1233_v53 = vsel %vm627_vm1, %v1228_v41, %v1232_v39  ;;  %v1040_v55 = vsel %vm1000_vm15, %v4532_v47, %v1020_v49  ;;  %v1236_v60 = vor.u32 %v1234_v51, %v1232_v39  ;;  %v1329_v34 = vsel %vm737_vm0, %v1326_v32, %v1328_v61 }
 0x181   : > { %1295 = vrot.lane.b32.xlu0 %v1233_v53, %s4851_s6  ;;  %v5191_v42 = vpack.c.bf16 %v1040_v55, %v1039_v54  ;;  %v1038_v3 = vsel %vm998_vm5, %v945_v28, %v1018_v57  ;;  %v1244_v37 = vor.u32 %v1242_v19, %v1240_v0  ;;  %vm1877_vm5 = vsmask.f32 6400 }
 0x182   : > { %v5194_v5 = vpack.c.bf16 %v1038_v3, %v1037_v2  ;;  %v1241_v6 = vsel %vm627_vm1, %v1236_v60, %v1240_v0 }
 0x183   : > { %v4535_v44 = vpop.f32.mrb[0].mxu1  ;;  %v1254_v20 = vshll.u32 %v5191_v42, 16  ;;  %v1332_v32 = vrot.slane %v5191_v42, 1  ;;  %v1258_v55 = vshrl.u32 %v5191_v42, 16 }
 0x184   : > { %1297 = vrot.lane.b32.xlu1 %v1241_v6, %s4851_s6  ;;  %vm1003_vm6 = vcmp.gt.f32.partialorder %v4535_v44, 0.0  ;;  %v1023_v23 = vmul.f32 0.2, %v4535_v44  ;;  %v958_v24 = vpop.f32.mrb[1].mxu1  ;;  %v1246_v25 = vshll.u32 %v5194_v5, 16  ;;  %v1250_v41 = vshrl.u32 %v5194_v5, 16 }
 0x185   : > { %1344 = vrot.lane.b32.xlu0 %v1327_v58, %s4850_s5  ;;  %v1021_v29 = vmul.f32 0.2, %v958_v24  ;;  %v4536_v30 = vpop.f32.mrb[2].mxu1  ;;  %vm1001_vm8 = vcmp.gt.f32.partialorder %v958_v24, 0.0  ;;  %v1256_v43 = vrot.slane %v1254_v20, 1  ;;  %v1330_v49 = vrot.slane %v5194_v5, 1 }
 0x186   : > { %v1043_v38 = vsel %vm1003_vm6, %v4535_v44, %v1023_v23  ;;  %v961_v36 = vpop.f32.mrb[3].mxu1  ;;  %v1248_v40 = vrot.slane %v1246_v25, 1  ;;  %vm1997_vm6 = vcmask 1044480  }
 0x187   : > { %v1185_v45 = vsel %vm1105_vm7, %v1043_v38, 0.0  ;;  %vm1002_vm9 = vcmp.gt.f32.partialorder %v961_v36, 0.0  ;;  %v1022_v46 = vmul.f32 0.2, %v961_v36  ;;  %v1041_v28 = vsel %vm1001_vm8, %v958_v24, %v1021_v29 }
 0x188   : > { %1346 = vrot.lane.b32.xlu1 %v1329_v34, %s4850_s5  ;;  %v5207_v47 = vpack.c.bf16 %v4852_v56, %v1185_v45  ;;  %v1249_v48 = vsel %vm627_vm1, %v1244_v37, %v1248_v40  ;;  %v1252_v39 = vor.u32 %v1250_v41, %v1248_v40  ;;  %v1331_v54 = vsel %vm737_vm0, %v1328_v61, %v1330_v49 }
 0x189   : > { %v1042_v51 = vsel %vm1002_vm9, %v961_v36, %v1022_v46  ;;  %1299 = vrot.lane.b32.xlu0 %v1249_v48, %s4851_s6  ;;  %v1333_v2 = vsel %vm737_vm0, %v1330_v49, %v1332_v32  ;;  %v1260_v3 = vor.u32 %v1258_v55, %v1256_v43 }
 0x18a   : > { %v5212_v57 = vpack.c.bf16 %v1042_v51, %v1041_v28  ;;  %v1257_v53 = vsel %vm627_vm1, %v1252_v39, %v1256_v43  ;;  %v1270_v0 = vshll.u32 %v5207_v47, 16  ;;  %v1274_v24 = vshrl.u32 %v5207_v47, 16 }
 0x18b   : > { %v1336_v29 = vrot.slane %v5207_v47, 1 }
 0x18c   : > { %1301 = vrot.lane.b32.xlu1 %v1257_v53, %s4851_s6  ;;  %v1262_v60 = vshll.u32 %v5212_v57, 16  ;;  %v1266_v44 = vshrl.u32 %v5212_v57, 16  ;;  %v1272_v61 = vrot.slane %v1270_v0, 1  ;;  %v1334_v20 = vrot.slane %v5212_v57, 1 }
 0x18d   : > { %1348 = vrot.lane.b32.xlu0 %v1331_v54, %s4850_s5  ;;  %v1339_v38 = vsel %vm737_vm0, %v1336_v29, %v4918_v8 }
 0x18e   : > { %v1264_v6 = vrot.slane %v1262_v60, 1  ;;  %v1335_v25 = vsel %vm737_vm0, %v1332_v32, %v1334_v20  ;;  %v1276_v30 = vor.u32 %v1274_v24, %v1272_v61  ;;  %v1337_v34 = vsel %vm737_vm0, %v1334_v20, %v1336_v29  ;;  %v4539_v24 = vpop.f32.mrb[4].mxu1 }
 0x190   : > { %1350 = vrot.lane.b32.xlu1 %v1333_v2, %s4850_s5  ;;  %v1265_v58 = vsel %vm627_vm1, %v1260_v3, %v1264_v6  ;;  %v1268_v19 = vor.u32 %v1266_v44, %v1264_v6  ;;  %v1281_v37 = vsel %vm627_vm1, %v1276_v30, %v4929_v14  ;;  %v4800_v30 = vld [vmem:[%s6250_s2 + $0x68] sm:$0xff]  }
 0x191   : > { %1303 = vrot.lane.b32.xlu0 %v1265_v58, %s4851_s6 }
 0x192   : > { %v1273_v23 = vsel %vm627_vm1, %v1268_v19, %v1272_v61 }
 0x194   : > { %1305 = vrot.lane.b32.xlu1 %v1273_v23, %s4851_s6 }
 0x195   : > { %1352 = vrot.lane.b32.xlu0 %v1335_v25, %s4850_s5  ;;  %v974_v25 = vpop.f32.mrb[5].mxu1 }
 0x196   : > { %v4540_v29 = vpop.f32.mrb[6].mxu1 }
 0x198   : > { %1354 = vrot.lane.b32.xlu1 %v1337_v34, %s4850_s5  ;;  %v4801_v34 = vld [vmem:[%s6250_s2 + $0x70] sm:$0xff]  }
 0x199   : > { %1307 = vrot.lane.b32.xlu0 %v1281_v37, %s4851_s6  ;;  %v4802_v37 = vld [vmem:[%s6250_s2 + $0x78] sm:$0xff]  }
 0x19d   : > { %1356 = vrot.lane.b32.xlu0 %v1339_v38, %s4850_s5  ;;  %v4797_v38 = vld [vmem:[%s4908_s23] sm:$0xff]  }
 0x1ee   : > { %v1294_v36 = vpop.permute.xlu1 %1293 }
 0x1ef   : > { %v1363_v40 = vsel %vm777_vm2, %v5165_v52, %v1294_v36  ;;  %v363_v36 = vunpack.c.h.bf16 %v4797_v38 }
 0x1f2   : > { %v1343_v41 = vpop.permute.xlu1 %1342 }
 0x1f3   : > { %v1383_v45 = vsel %vm798_vm3, %v1363_v40, %v1343_v41  ;;  %v1296_v46 = vpop.permute.xlu0 %1295  ;;  %v1462_v40 = vrot.slane %v4924_v11, 2  ;;  %v1464_v41 = vrot.slane %v4926_v12, 2  ;;  %v1478_v11 = vrot.slane %v5009_v59, 2 }
 0x1f4   : > { %4553 = vmatprep.mubr.msk.bf16.mxu1 %vm855_vm4, %v1383_v45  ;;  %v1365_v48 = vsel %vm777_vm2, %v5160_v50, %v1296_v46  ;;  %v1466_v45 = vrot.slane %v4931_v15, 2  ;;  %v1460_v46 = vrot.slane %v363_v36, 2  ;;  %v1480_v12 = vrot.slane %v5014_v62, 2 }
 0x1f6   : > { %v1298_v43 = vpop.permute.xlu1 %1297 }
 0x1f7   : > { %v1345_v39 = vpop.permute.xlu0 %1344  ;;  %v1367_v28 = vsel %vm777_vm2, %v5175_v9, %v1298_v43  ;;  %v1714_v43 = vadd.s32 4294967282, %v5150_v21 }
 0x1f8   : > { %v1385_v49 = vsel %vm798_vm3, %v1365_v48, %v1345_v39  ;;  %v1470_v48 = vrot.slane %v4950_v26, 2  ;;  %v1472_v39 = vrot.slane %v4952_v27, 2  ;;  %v377_v26 = vunpack.c.h.bf16 %v5028_v17 }
 0x1f9   : > { %4554 = vmatmul.mubr.msk.bf16.vlgmr.msra.gmra.mrb[8].mxu1 %vm855_vm4, %v1385_v49  ;;  %v1468_v49 = vrot.slane %v4933_v16, 2  ;;  %vm1734_vm11 = vcmp.ge.s32.totalorder %v1714_v43, 0 }
 0x1fa   : > { %v1347_v51 = vpop.permute.xlu1 %1346 }
 0x1fb   : > { %v1387_v52 = vsel %vm798_vm3, %v1367_v28, %v1347_v51  ;;  %v1300_v53 = vpop.permute.xlu0 %1299  ;;  %v1465_v28 = vsel %vm1458_vm10, %v1462_v40, %v1464_v41  ;;  %v1474_v51 = vrot.slane %v4958_v31, 2  ;;  %v1469_v31 = vsel %vm1458_vm10, %v1466_v45, %v1468_v49 }
 0x1fc   : > { %4557 = vmatprep.mubr.msk.bf16.mxu1 %vm855_vm4, %v1387_v52  ;;  %v1369_v54 = vsel %vm777_vm2, %v5173_v22, %v1300_v53  ;;  %v5306_v52 = vld [vmem:[%s5279_s28] sm:$0xff]   ;;  %v1467_v53 = vsel %vm1458_vm10, %v1464_v41, %v1466_v45  ;;  %v5357_v45 = vadd.s32 4294967282, %v4911_v4 }
 0x1fd   : > { %v1475_v62 = vsel %vm1458_vm10, %v1472_v39, %v1474_v51 }
 0x1fe   : > { %v1302_v32 = vpop.permute.xlu1 %1301 }
 0x1ff   : > { %v1349_v55 = vpop.permute.xlu0 %1348  ;;  %v1371_v60 = vsel %vm777_vm2, %v5194_v5, %v1302_v32  ;;  %v1463_v32 = vsel %vm1458_vm10, %v1460_v46, %v1462_v40 }
 0x200   : > { %v1389_v50 = vsel %vm798_vm3, %v1369_v54, %v1349_v55  ;;  %v1473_v54 = vsel %vm1458_vm10, %v1470_v48, %v1472_v39  ;;  %v1471_v55 = vsel %vm1458_vm10, %v1468_v49, %v1470_v48 }
 0x201   : > { %4558 = vmatmul.mubr.msk.bf16.gmra.mrb[12].mxu1 %vm855_vm4, %v1389_v50  ;;  %v5316_v50 = vsel %vm1458_vm10, %v1478_v11, %v1480_v12 }
 0x202   : > { %v1351_v0 = vpop.permute.xlu1 %1350 }
 0x203   : > { %v1391_v9 = vsel %vm798_vm3, %v1371_v60, %v1351_v0  ;;  %v1304_v2 = vpop.permute.xlu0 %1303  ;;  %v1476_v60 = vrot.slane %v4962_v33, 2 }
 0x204   : > { %4561 = vmatprep.mubr.msk.bf16.mxu1 %vm855_vm4, %v1391_v9  ;;  %v1373_v6 = vsel %vm777_vm2, %v5191_v42, %v1304_v2  ;;  %v1482_v2 = vrot.slane %v5016_v63, 2 }
 0x205   : > { %v1477_v29 = vsel %vm1458_vm10, %v1474_v51, %v1476_v60 }
 0x206   : > { %v1306_v3 = vpop.permute.xlu1 %1305 }
 0x207   : > { %v1353_v44 = vpop.permute.xlu0 %1352  ;;  %v1375_v58 = vsel %vm777_vm2, %v5212_v57, %v1306_v3  ;;  %v977_v57 = vpop.f32.mrb[7].mxu1  ;;  %v378_v3 = vunpack.c.l.bf16 %v5306_v52 }
 0x208   : > { %v1393_v22 = vsel %vm798_vm3, %v1373_v6, %v1353_v44  ;;  %v1486_v44 = vrot.slane %v5043_v35, 2 }
 0x209   : > { %4562 = vmatmul.mubr.msk.bf16.gmra.mrb[16].mxu1 %vm855_vm4, %v1393_v22  ;;  %v1488_v22 = vrot.slane %v377_v26, 2 }
 0x20a   : > { %v1355_v5 = vpop.permute.xlu1 %1354 }
 0x20b   : > { %v1395_v19 = vsel %vm798_vm3, %v1375_v58, %v1355_v5  ;;  %v1308_v61 = vpop.permute.xlu0 %1307  ;;  %v5349_v38 = vsel %vm1458_vm10, %v1486_v44, %v1488_v22 }
 0x20c   : > { %4565 = vmatprep.mubr.msk.bf16.mxu1 %vm855_vm4, %v1395_v19  ;;  %v1377_v20 = vsel %vm777_vm2, %v5207_v47, %v1308_v61  ;;  %v4799_v47 = vld [vmem:[%s6250_s2 + $0x60] sm:$0xff]   ;;  %v1484_v61 = vrot.slane %v5025_v10, 2 }
 0x20d   : > { %4573 = vmatprep.subr.bf16.mxu0 %v4799_v47  ;;  %v4803_v10 = vld [vmem:[%s6250_s2 + $0x80] sm:$0xff]  }
 0x20e   : > { %4574 = vmatpush3.bf16.msra.mxu0 %v4799_v47  ;;  %v5360_v46 = vsel %vm1458_vm10, %v1482_v2, %v1484_v61 }
 0x20f   : > { %v1357_v23 = vpop.permute.xlu0 %1356  ;;  %4575 = vmatprep.subr.bf16.mxu0 %v4800_v30 }
 0x210   : > { %v1397_v42 = vsel %vm798_vm3, %v1377_v20, %v1357_v23 }
 0x211   : > { %4566 = vmatmul.mubr.msk.bf16.gmra.mrb[20].mxu1 %vm855_vm4, %v1397_v42  ;;  %v5329_v42 = vrot.slane %v378_v3, 2 }
 0x212   : > { %4576 = vmatpush3.bf16.msra.mxu0 %v4800_v30 }
 0x213   : > { %4577 = vmatprep.subr.bf16.mxu0 %v4801_v34 }
 0x216   : > { %4578 = vmatpush3.bf16.msra.mxu0 %v4801_v34  ;;  %v1483_v34 = vsel %vm1458_vm10, %v1480_v12, %v1482_v2 }
 0x217   : > { %4579 = vmatprep.subr.bf16.mxu0 %v4802_v37 }
 0x21a   : > { %4580 = vmatpush3.bf16.msra.mxu0 %v4802_v37  ;;  %v1479_v37 = vsel %vm1458_vm10, %v1476_v60, %v1478_v11 }
 0x21b   : > { %4581 = vmatprep.subr.bf16.mxu0 %v4803_v10 }
 0x21e   : > { %4582 = vmatpush3.bf16.msra.mxu0 %v4803_v10 }
 0x2cc   : > { %v4555_v15 = vpop.f32.mrb[8].mxu1 }
 0x2cd   : > { %v1581_v27 = vadd.f32 %v4555_v15, %v1465_v28  ;;  %v1572_v16 = vpop.f32.mrb[9].mxu1  ;;  %v5368_v28 = vsel %vm1458_vm10, %v1488_v22, %v5329_v42 }
 0x2ce   : > { %v4556_v59 = vpop.f32.mrb[10].mxu1  ;;  %v5383_v16 = vsel %vm1458_vm10, %v1484_v61, %v1486_v44 }
 0x2cf   : > { %v1673_v0 = vmul.f32 0.2, %v1581_v27  ;;  %v5319_v9 = vadd.f32 %v4556_v59, %v1467_v53  ;;  %v1575_v17 = vpop.f32.mrb[11].mxu1  ;;  %vm1653_vm13 = vcmp.gt.f32.partialorder %v1581_v27, 0.0  ;;  %v2708_v5 = vrot.slane %v1581_v27, 4 }
 0x2d0   : > { %v1576_v6 = vadd.f32 %v1575_v17, %v1463_v32  ;;  %v4804_v17 = vld [vmem:[%s6250_s2 + $0x88] sm:$0xff]  }
 0x2d1   : > { %vm1654_vm14 = vcmp.gt.f32.partialorder %v5319_v9, 0.0  ;;  %v1674_v58 = vmul.f32 0.2, %v5319_v9  ;;  %v2710_v33 = vrot.slane %v5319_v9, 4  ;;  %v1693_v63 = vsel %vm1653_vm13, %v1581_v27, %v1673_v0  ;;  %4583 = vmatprep.subr.bf16.mxu0 %v4804_v17 }
 0x2d2   : > { %vm1652_vm15 = vcmp.gt.f32.partialorder %v1576_v6, 0.0  ;;  %v1672_v19 = vmul.f32 0.2, %v1576_v6  ;;  %v2706_v20 = vrot.slane %v1576_v6, 4  ;;  %4584 = vmatpush3.bf16.msra.mxu0 %v4804_v17 }
 0x2d3   : > { %v1694_v23 = vsel %vm1654_vm14, %v5319_v9, %v1674_v58  ;;  %v5334_v35 = vsel %vm2704_vm12, %v2708_v5, %v2710_v33  ;;  %4637 = vmatprep.subr.bf16.mxu0 %v4852_v56 }
 0x2d4   : > { %v5336_v24 = vpack.c.bf16 %v1694_v23, %v1693_v63  ;;  %v1692_v25 = vsel %vm1652_vm15, %v1576_v6, %v1672_v19  ;;  %v5343_v57 = vsel %vm2704_vm12, %v2706_v20, %v2708_v5  ;;  %v4559_v30 = vpop.f32.mrb[12].mxu1 }
 0x2d5   : > { %v1834_v47 = vsel %vm1734_vm11, %v1692_v25, 0.0  ;;  %v5354_v40 = vadd.f32 %v4559_v30, %v1473_v54  ;;  %v1588_v41 = vpop.f32.mrb[13].mxu1 }
 0x2d6   : > { %v5352_v36 = vpack.c.bf16 %v1834_v47, %v4852_v56  ;;  %v5362_v43 = vadd.f32 %v1588_v41, %v1469_v31  ;;  %v4560_v48 = vpop.f32.mrb[14].mxu1  ;;  %v1887_v39 = vshrl.u32 %v5336_v24, 16  ;;  %v1890_v49 = vshll.u32 %v5336_v24, 16 }
 0x2d7   : > { %vm1657_vm7 = vcmp.gt.f32.partialorder %v5354_v40, 0.0  ;;  %v1677_v4 = vmul.f32 0.2, %v5354_v40  ;;  %v5372_v51 = vadd.f32 %v4560_v48, %v1475_v62  ;;  %v1591_v11 = vpop.f32.mrb[15].mxu1  ;;  %v1999_v20 = vrot.slane %v5336_v24, 3 }
 0x2d8   : > { %v1879_v12 = vshrl.u32 %v5352_v36, 16  ;;  %vm1655_vm8 = vcmp.gt.f32.partialorder %v5362_v43, 0.0  ;;  %v1675_v15 = vmul.f32 0.2, %v5362_v43  ;;  %v5377_v53 = vadd.f32 %v1591_v11, %v1471_v55 }
 0x2d9   : > { %v1882_v32 = vshll.u32 %v5352_v36, 16  ;;  %vm1658_vm9 = vcmp.gt.f32.partialorder %v5372_v51, 0.0  ;;  %v1678_v26 = vmul.f32 0.2, %v5372_v51  ;;  %v1697_v54 = vsel %vm1657_vm7, %v5354_v40, %v1677_v4 }
 0x2da   : > { %v1881_v27 = vrot.slane %v1879_v12, 1  ;;  %vm1656_vm11 = vcmp.gt.f32.partialorder %v5377_v53, 0.0  ;;  %v1676_v31 = vmul.f32 0.2, %v5377_v53  ;;  %v1695_v62 = vsel %vm1655_vm8, %v5362_v43, %v1675_v15 }
 0x2db   : > { %v1884_v59 = vrot.slane %v1882_v32, 2  ;;  %v1698_v55 = vsel %vm1658_vm9, %v5372_v51, %v1678_v26  ;;  %v1889_v60 = vrot.slane %v1887_v39, 1  ;;  %v1892_v0 = vrot.slane %v1890_v49, 2 }
 0x2dc   : > { %v5393_v2 = vpack.c.bf16 %v1698_v55, %v1697_v54  ;;  %v1696_v3 = vsel %vm1656_vm11, %v5377_v53, %v1676_v31  ;;  %v4563_v6 = vpop.f32.mrb[16].mxu1  ;;  %v1998_v22 = vrot.slane %v5352_v36, 3  ;;  %v2712_v47 = vrot.slane %v5362_v43, 4 }
 0x2dd   : > { %v1885_v44 = vor.u32 %v1884_v59, %v1881_v27  ;;  %v5397_v58 = vpack.c.bf16 %v1696_v3, %v1695_v62  ;;  %v5400_v5 = vadd.f32 %v4563_v6, %v5316_v50  ;;  %v1604_v19 = vpop.f32.mrb[17].mxu1  ;;  %v1893_v61 = vor.u32 %v1892_v0, %v1889_v60 }
 0x2de   : > { %v5403_v63 = vadd.f32 %v1604_v19, %v1477_v29  ;;  %v4564_v23 = vpop.f32.mrb[18].mxu1  ;;  %v1905_v25 = vshrl.u32 %v5393_v2, 16  ;;  %v1908_v10 = vshll.u32 %v5393_v2, 16  ;;  %v2000_v49 = vsel %vm1997_vm6, %v1998_v22, %v1999_v20 }
 0x2df   : > { %vm1661_vm13 = vcmp.gt.f32.partialorder %v5400_v5, 0.0  ;;  %v1681_v50 = vmul.f32 0.2, %v5400_v5  ;;  %v5410_v30 = vadd.f32 %v4564_v23, %v1483_v34  ;;  %v1607_v41 = vpop.f32.mrb[19].mxu1  ;;  %v1894_v48 = vsel %vm1877_vm5, %v1885_v44, %v1893_v61 }
 0x2e0   : > { %v1679_v29 = vmul.f32 0.2, %v5403_v63  ;;  %v5415_v39 = vadd.f32 %v1607_v41, %v1479_v37  ;;  %1967 = vrot.lane.b32.xlu1 %v1894_v48, %s4851_s6  ;;  %v1896_v4 = vshrl.u32 %v5397_v58, 16  ;;  %vm1659_vm14 = vcmp.gt.f32.partialorder %v5403_v63, 0.0 }
 0x2e1   : > { %vm1662_vm15 = vcmp.gt.f32.partialorder %v5410_v30, 0.0  ;;  %v1682_v34 = vmul.f32 0.2, %v5410_v30  ;;  %v1899_v11 = vshll.u32 %v5397_v58, 16  ;;  %v1701_v12 = vsel %vm1661_vm13, %v5400_v5, %v1681_v50 }
 0x2e2   : > { %vm1660_vm7 = vcmp.gt.f32.partialorder %v5415_v39, 0.0  ;;  %v1680_v37 = vmul.f32 0.2, %v5415_v39  ;;  %v1898_v15 = vrot.slane %v1896_v4, 1  ;;  %v1907_v27 = vrot.slane %v1905_v25, 1 }
 0x2e3   : > { %v1702_v32 = vsel %vm1662_vm15, %v5410_v30, %v1682_v34  ;;  %v1901_v26 = vrot.slane %v1899_v11, 2  ;;  %v1910_v54 = vrot.slane %v1908_v10, 2  ;;  %v1699_v31 = vsel %vm1659_vm14, %v5403_v63, %v1679_v29 }
 0x2e4   : > { %v5431_v59 = vpack.c.bf16 %v1702_v32, %v1701_v12  ;;  %v1700_v62 = vsel %vm1660_vm7, %v5415_v39, %v1680_v37  ;;  %2017 = vrot.lane.b32.xlu1 %v2000_v49, %s4850_s5  ;;  %v4567_v55 = vpop.f32.mrb[20].mxu1  ;;  %v5440_v60 = vsel %vm2704_vm12, %v2710_v33, %v2712_v47  ;;  %vm1767_vm8 = vcmp.lt.s32.totalorder %v5357_v45, 100 }
 0x2e5   : > { %v5442_v0 = vpack.c.bf16 %v1700_v62, %v1699_v31  ;;  %v5445_v17 = vadd.f32 %v4567_v55, %v5349_v38  ;;  %v1620_v3 = vpop.f32.mrb[21].mxu1  ;;  %v1902_v6 = vor.u32 %v1901_v26, %v1898_v15  ;;  %v1911_v44 = vor.u32 %v1910_v54, %v1907_v27 }
 0x2e6   : > { %v5449_v22 = vadd.f32 %v1620_v3, %v5360_v46  ;;  %v4568_v19 = vpop.f32.mrb[22].mxu1  ;;  %v2001_v23 = vrot.slane %v5397_v58, 3  ;;  %v2003_v9 = vrot.slane %v5393_v2, 3  ;;  %v1923_v48 = vshrl.u32 %v5431_v59, 16 }
 0x2e7   : > { %vm1665_vm9 = vcmp.gt.f32.partialorder %v5445_v17, 0.0  ;;  %v1685_v33 = vmul.f32 0.2, %v5445_v17  ;;  %v5456_v38 = vadd.f32 %v4568_v19, %v5368_v28  ;;  %v1903_v25 = vsel %vm1877_vm5, %v1893_v61, %v1902_v6  ;;  %v1623_v10 = vpop.f32.mrb[23].mxu1 }
 0x2e8   : > { %v1683_v50 = vmul.f32 0.2, %v5449_v22  ;;  %1969 = vrot.lane.b32.xlu0 %v1903_v25, %s4851_s6  ;;  %v5462_v46 = vadd.f32 %v1623_v10, %v5383_v16  ;;  %v1912_v41 = vsel %vm1877_vm5, %v1902_v6, %v1911_v44  ;;  %vm1663_vm11 = vcmp.gt.f32.partialorder %v5449_v22, 0.0 }
 0x2e9   : > { %v1705_v29 = vsel %vm1665_vm9, %v5445_v17, %v1685_v33  ;;  %1971 = vrot.lane.b32.xlu1 %v1912_v41, %s4851_s6  ;;  %v1914_v28 = vshrl.u32 %v5442_v0, 16  ;;  %v1917_v61 = vshll.u32 %v5442_v0, 16  ;;  %v2002_v4 = vsel %vm1997_vm6, %v1999_v20, %v2001_v23 }
 0x2ea   : > { %v1847_v49 = vsel %vm1767_vm8, %v1705_v29, 0.0  ;;  %vm1664_vm13 = vcmp.gt.f32.partialorder %v5462_v46, 0.0  ;;  %v1684_v16 = vmul.f32 0.2, %v5462_v46  ;;  %v2004_v11 = vsel %vm1997_vm6, %v2001_v23, %v2003_v9 }
 0x2eb   : > { %v5479_v34 = vpack.c.bf16 %v4852_v56, %v1847_v49  ;;  %v1916_v12 = vrot.slane %v1914_v28, 1  ;;  %v1919_v37 = vrot.slane %v1917_v61, 2  ;;  %v1703_v15 = vsel %vm1663_vm11, %v5449_v22, %v1683_v50 }
 0x2ec   : > { %v1704_v45 = vsel %vm1664_vm13, %v5462_v46, %v1684_v16  ;;  %2019 = vrot.lane.b32.xlu0 %v2002_v4, %s4850_s5  ;;  %v1925_v32 = vrot.slane %v1923_v48, 1  ;;  %v1926_v26 = vshll.u32 %v5431_v59, 16  ;;  %v2005_v55 = vrot.slane %v5442_v0, 3 }
 0x2ed   : > { %v5486_v27 = vpack.c.bf16 %v1704_v45, %v1703_v15  ;;  %2021 = vrot.lane.b32.xlu1 %v2004_v11, %s4850_s5  ;;  %v1920_v20 = vor.u32 %v1919_v37, %v1916_v12  ;;  %v1941_v54 = vshrl.u32 %v5479_v34, 16  ;;  %v1944_v31 = vshll.u32 %v5479_v34, 16 }
 0x2ee   : > { %v1928_v62 = vrot.slane %v1926_v26, 2  ;;  %v2007_v33 = vrot.slane %v5431_v59, 3  ;;  %v2716_v48 = vrot.slane %v5354_v40, 4  ;;  %v2718_v29 = vrot.slane %v5372_v51, 4 }
 0x2ef   : > { %v1921_v3 = vsel %vm1877_vm5, %v1911_v44, %v1920_v20  ;;  %v1932_v6 = vshrl.u32 %v5486_v27, 16  ;;  %v1935_v19 = vshll.u32 %v5486_v27, 16  ;;  %v1943_v25 = vrot.slane %v1941_v54, 1 }
 0x2f0   : > { %1973 = vrot.lane.b32.xlu0 %v1921_v3, %s4851_s6  ;;  %v1929_v23 = vor.u32 %v1928_v62, %v1925_v32  ;;  %v1946_v10 = vrot.slane %v1944_v31, 2  ;;  %v2734_v28 = vrot.slane %v5456_v38, 4  ;;  %v2006_v61 = vsel %vm1997_vm6, %v2003_v9, %v2005_v55 }
 0x2f1   : > { %v1934_v50 = vrot.slane %v1932_v6, 1  ;;  %v1937_v41 = vrot.slane %v1935_v19, 2  ;;  %v1955_v49 = vrot.slane %v4849_v13, 2  ;;  %v5505_v4 = vsel %vm2704_vm12, %v2716_v48, %v2718_v29 }
 0x2f2   : > { %v1930_v44 = vsel %vm1877_vm5, %v1920_v20, %v1929_v23  ;;  %v2714_v11 = vrot.slane %v5377_v53, 4  ;;  %v2720_v40 = vrot.slane %v5403_v63, 4  ;;  %v2008_v51 = vsel %vm1997_vm6, %v2005_v55, %v2007_v33 }
 0x2f3   : > { %1975 = vrot.lane.b32.xlu1 %v1930_v44, %s4851_s6  ;;  %v1938_v16 = vor.u32 %v1937_v41, %v1934_v50  ;;  %v2724_v12 = vrot.slane %v5400_v5, 4  ;;  %v2726_v9 = vrot.slane %v5410_v30, 4  ;;  %v2722_v13 = vrot.slane %v5415_v39, 4 }
 0x2f4   : > { %2023 = vrot.lane.b32.xlu0 %v2006_v61, %s4850_s5  ;;  %v1947_v15 = vor.u32 %v1946_v10, %v1943_v25  ;;  %v5518_v45 = vsel %vm2704_vm12, %v2712_v47, %v2714_v11  ;;  %v5521_v53 = vsel %vm2704_vm12, %v2718_v29, %v2720_v40  ;;  %v5524_v63 = vsel %vm2704_vm12, %v2714_v11, %v2716_v48 }
 0x2f5   : > { %v1939_v37 = vsel %vm1877_vm5, %v1929_v23, %v1938_v16  ;;  %v5527_v5 = vsel %vm2704_vm12, %v2724_v12, %v2726_v9  ;;  %v5530_v30 = vsel %vm2704_vm12, %v2720_v40, %v2722_v13  ;;  %v2728_v39 = vrot.slane %v5449_v22, 4 }
 0x2f6   : > { %v2009_v43 = vrot.slane %v5486_v27, 3  ;;  %v5536_v47 = vsel %vm2704_vm12, %v2722_v13, %v2724_v12  ;;  %v2732_v32 = vrot.slane %v5445_v17, 4  ;;  %v2730_v26 = vrot.slane %v5462_v46, 4 }
 0x2f7   : > { %2025 = vrot.lane.b32.xlu1 %v2008_v51, %s4850_s5  ;;  %v1948_v20 = vsel %vm1877_vm5, %v1938_v16, %v1947_v15  ;;  %v5543_v54 = vsel %vm2704_vm12, %v2726_v9, %v2728_v39  ;;  %v5559_v46 = vor.u32 %v1955_v49, %v4929_v14  ;;  %v2011_v55 = vrot.slane %v5479_v34, 3 }
 0x2f8   : > { %1977 = vrot.lane.b32.xlu0 %v1939_v37, %s4851_s6  ;;  %v5548_v22 = vsel %vm2704_vm12, %v2732_v32, %v2734_v28  ;;  %v5551_v31 = vsel %vm2704_vm12, %v2728_v39, %v2730_v26  ;;  %v5554_v62 = vsel %vm2704_vm12, %v2730_v26, %v2732_v32  ;;  %v2010_v17 = vsel %vm1997_vm6, %v2007_v33, %v2009_v43 }
 0x2f9   : > { %v2012_v3 = vsel %vm1997_vm6, %v2009_v43, %v2011_v55  ;;  %v1957_v6 = vsel %vm1877_vm5, %v1947_v15, %v5559_v46  ;;  %v5568_v19 = vrot.slane %v4848_v7, 3 }
 0x2fb   : > { %1979 = vrot.lane.b32.xlu1 %v1948_v20, %s4851_s6  ;;  %v2014_v23 = vsel %vm1997_vm6, %v2011_v55, %v5568_v19 }
 0x2fc   : > { %2027 = vrot.lane.b32.xlu0 %v2010_v17, %s4850_s5 }
 0x2ff   : > { %2029 = vrot.lane.b32.xlu1 %v2012_v3, %s4850_s5 }
 0x300   : > { %1981 = vrot.lane.b32.xlu0 %v1957_v6, %s4851_s6 }
 0x303   : > { %4764 = vrot.lane.b32.xlu1 %v5131_v18, %s4851_s6 }
 0x304   : > { %2031 = vrot.lane.b32.xlu0 %v2014_v23, %s4850_s5 }
 0x307   : > { %1360 = vrot.lane.b32.xlu1 %v4918_v8, %s4850_s5 }
 0x308   : > { %1358 = vrot.lane.b32.xlu0 %v4918_v8, %s4850_s5 }
 0x352   : > { %v1968_v33 = vpop.permute.xlu1 %1967 }
 0x353   : > { %v2038_v7 = vsel %vm777_vm2, %v5352_v36, %v1968_v33 }
 0x356   : > { %v2018_v25 = vpop.permute.xlu1 %2017 }
 0x357   : > { %v2059_v10 = vsel %vm798_vm3, %v2038_v7, %v2018_v25 }
 0x358   : > { %4585 = vmatprep.mubr.msk.bf16.mxu0 %vm855_vm4, %v2059_v10 }
 0x35a   : > { %v1970_v50 = vpop.permute.xlu0 %1969 }
 0x35b   : > { %v1972_v41 = vpop.permute.xlu1 %1971  ;;  %v2040_v48 = vsel %vm777_vm2, %v5336_v24, %v1970_v50  ;;  %v4807_v50 = vld [vmem:[%s6250_s2 + $0x98] sm:$0xff]  }
 0x35c   : > { %v2042_v44 = vsel %vm777_vm2, %v5397_v58, %v1972_v41  ;;  %v4808_v41 = vld [vmem:[%s6250_s2 + $0xa0] sm:$0xff]  }
 0x35e   : > { %v2020_v29 = vpop.permute.xlu0 %2019 }
 0x35f   : > { %v2061_v61 = vsel %vm798_vm3, %v2040_v48, %v2020_v29  ;;  %v2022_v49 = vpop.permute.xlu1 %2021  ;;  %v4809_v48 = vld [vmem:[%s6250_s2 + $0xa8] sm:$0xff]   ;;  %v4810_v29 = vld [vmem:[%s6250_s2 + $0xb0] sm:$0xff]  }
 0x360   : > { %v2063_v16 = vsel %vm798_vm3, %v2042_v44, %v2022_v49  ;;  %4586 = vmatmul.mubr.msk.bf16.vlgmr.msra.gmra.mrb[12].mxu0 %vm855_vm4, %v2061_v61  ;;  %v2306_v61 = vadd.s32 4294967285, %v5150_v21 }
 0x361   : > { %4589 = vmatprep.mubr.msk.bf16.mxu0 %vm855_vm4, %v2063_v16 }
 0x362   : > { %v1974_v36 = vpop.permute.xlu0 %1973  ;;  %vm2325_vm15 = vcmp.ge.s32.totalorder %v2306_v61, 0 }
 0x363   : > { %v2044_v40 = vsel %vm777_vm2, %v5393_v2, %v1974_v36 }
 0x365   : > { %v1976_v11 = vpop.permute.xlu1 %1975 }
 0x366   : > { %v2024_v51 = vpop.permute.xlu0 %2023  ;;  %v2046_v58 = vsel %vm777_vm2, %v5442_v0, %v1976_v11 }
 0x367   : > { %v2065_v24 = vsel %vm798_vm3, %v2044_v40, %v2024_v51 }
 0x368   : > { %4590 = vmatmul.mubr.msk.bf16.gmra.mrb[16].mxu0 %vm855_vm4, %v2065_v24  ;;  %v4811_v24 = vld [vmem:[%s6250_s2 + $0xb8] sm:$0xff]  }
 0x369   : > { %v2026_v12 = vpop.permute.xlu1 %2025 }
 0x36a   : > { %v2067_v9 = vsel %vm798_vm3, %v2046_v58, %v2026_v12  ;;  %v1978_v13 = vpop.permute.xlu0 %1977 }
 0x36b   : > { %4593 = vmatprep.mubr.msk.bf16.mxu0 %vm855_vm4, %v2067_v9  ;;  %v2048_v15 = vsel %vm777_vm2, %v5431_v59, %v1978_v13 }
 0x36d   : > { %v1980_v37 = vpop.permute.xlu1 %1979 }
 0x36e   : > { %v2028_v39 = vpop.permute.xlu0 %2027  ;;  %v2050_v43 = vsel %vm777_vm2, %v5486_v27, %v1980_v37 }
 0x36f   : > { %v2069_v2 = vsel %vm798_vm3, %v2048_v15, %v2028_v39 }
 0x370   : > { %4594 = vmatmul.mubr.msk.bf16.gmra.mrb[20].mxu0 %vm855_vm4, %v2069_v2 }
 0x371   : > { %v2030_v32 = vpop.permute.xlu1 %2029 }
 0x372   : > { %v2071_v0 = vsel %vm798_vm3, %v2050_v43, %v2030_v32  ;;  %v1982_v26 = vpop.permute.xlu0 %1981 }
 0x373   : > { %4597 = vmatprep.mubr.msk.bf16.mxu0 %vm855_vm4, %v2071_v0  ;;  %v2052_v17 = vsel %vm777_vm2, %v5479_v34, %v1982_v26  ;;  %v4806_v34 = vld [vmem:[%s6250_s2 + $0x90] sm:$0xff]  }
 0x374   : > { %4605 = vmatprep.subr.bf16.mxu1 %v4806_v34 }
 0x375   : > { %v4765_v20 = vpop.permute.xlu1 %4764  ;;  %4606 = vmatpush3.bf16.msra.mxu1 %v4806_v34 }
 0x376   : > { %v2032_v55 = vpop.permute.xlu0 %2031  ;;  %v4767_v59 = vunpack.i.h.bf16 %v4765_v20  ;;  %v4766_v3 = vunpack.i.l.bf16 %v4765_v20  ;;  %4607 = vmatprep.subr.bf16.mxu1 %v4807_v50 }
 0x377   : > { %v2073_v6 = vsel %vm798_vm3, %v2052_v17, %v2032_v55 }
 0x378   : > { %v1381_v23 = vsel %vm777_vm2, 0.0|0.0, %v4767_v59  ;;  %v1379_v33 = vsel %vm777_vm2, 0.0|0.0, %v4766_v3  ;;  %4598 = vmatmul.mubr.msk.bf16.gmra.mrb[24].mxu0 %vm855_vm4, %v2073_v6  ;;  %v5645_v59 = vadd.s32 104, %v4894_v1 }
 0x379   : > { %v1361_v27 = vpop.permute.xlu1 %1360  ;;  %4608 = vmatpush3.bf16.msra.mxu1 %v4807_v50 }
 0x37a   : > { %v1359_v7 = vpop.permute.xlu0 %1358  ;;  %v1401_v25 = vsel %vm798_vm3, %v1381_v23, %v1361_v27  ;;  %4609 = vmatprep.subr.bf16.mxu1 %v4808_v41 }
 0x37b   : > { %v1399_v10 = vsel %vm798_vm3, %v1379_v33, %v1359_v7 }
 0x37c   : > { %4569 = vmatprep.mubr.msk.bf16.mxu1 %vm855_vm4, %v1399_v10 }
 0x37d   : > { %4570 = vmatmul.mubr.msk.bf16.gmra.mrb[24].mxu1 %vm855_vm4, %v1401_v25 }
 0x37e   : > { %4610 = vmatpush3.bf16.msra.mxu1 %v4808_v41 }
 0x37f   : > { %4611 = vmatprep.subr.bf16.mxu1 %v4809_v48 }
 0x382   : > { %4612 = vmatpush3.bf16.msra.mxu1 %v4809_v48 }
 0x383   : > { %4613 = vmatprep.subr.bf16.mxu1 %v4810_v29 }
 0x386   : > { %4614 = vmatpush3.bf16.msra.mxu1 %v4810_v29 }
 0x387   : > { %4615 = vmatprep.subr.bf16.mxu1 %v4811_v24 }
 0x38a   : > { %4616 = vmatpush3.bf16.msra.mxu1 %v4811_v24 }
 0x433   : > { %v4587_v44 = vpop.f32.mrb[12].mxu0 }
 0x434   : > { %v2267_v49 = vmul.f32 0.2, %v4587_v44  ;;  %v2168_v16 = vpop.f32.mrb[13].mxu0  ;;  %vm2248_vm5 = vcmp.gt.f32.partialorder %v4587_v44, 0.0 }
 0x435   : > { %v4588_v36 = vpop.f32.mrb[14].mxu0 }
 0x436   : > { %vm2249_vm6 = vcmp.gt.f32.partialorder %v4588_v36, 0.0  ;;  %v2268_v11 = vmul.f32 0.2, %v4588_v36  ;;  %v2171_v40 = vpop.f32.mrb[15].mxu0  ;;  %v2286_v58 = vsel %vm2248_vm5, %v4587_v44, %v2267_v49 }
 0x437   : > { %vm2247_vm14 = vcmp.gt.f32.partialorder %v2171_v40, 0.0  ;;  %v2266_v51 = vmul.f32 0.2, %v2171_v40 }
 0x438   : > { %v2287_v12 = vsel %vm2249_vm6, %v4588_v36, %v2268_v11  ;;  %v5658_v36 = vadd.s32 4294967285, %v5645_v59 }
 0x439   : > { %v5637_v9 = vpack.c.bf16 %v2287_v12, %v2286_v58  ;;  %v2285_v13 = vsel %vm2247_vm14, %v2171_v40, %v2266_v51  ;;  %v379_v58 = vunpack.c.h.bf16 %v5306_v52 }
 0x43a   : > { %v2420_v37 = vsel %vm2325_vm15, %v2285_v13, 0.0  ;;  %vm2356_vm15 = vcmp.lt.s32.totalorder %v5658_v36, 100 }
 0x43b   : > { %v5640_v15 = vpack.c.bf16 %v2420_v37, %v4852_v56  ;;  %v4591_v39 = vpop.f32.mrb[16].mxu0  ;;  %v2469_v32 = vshll.u32 %v5637_v9, 16  ;;  %v2473_v29 = vshrl.u32 %v5637_v9, 16  ;;  %v2571_v49 = vrot.slane %v5637_v9, 1 }
 0x43c   : > { %v2271_v2 = vmul.f32 0.2, %v4591_v39  ;;  %v2184_v43 = vpop.f32.mrb[17].mxu0  ;;  %vm2252_vm7 = vcmp.gt.f32.partialorder %v4591_v39, 0.0 }
 0x43d   : > { %vm2250_vm8 = vcmp.gt.f32.partialorder %v2184_v43, 0.0  ;;  %v2269_v0 = vmul.f32 0.2, %v2184_v43  ;;  %v4592_v26 = vpop.f32.mrb[18].mxu0  ;;  %v2464_v20 = vshll.u32 %v5640_v15, 16  ;;  %v2462_v6 = vshrl.u32 %v5640_v15, 16 }
 0x43e   : > { %vm2253_vm9 = vcmp.gt.f32.partialorder %v4592_v26, 0.0  ;;  %v2272_v17 = vmul.f32 0.2, %v4592_v26  ;;  %v2187_v55 = vpop.f32.mrb[19].mxu0  ;;  %v2290_v33 = vsel %vm2252_vm7, %v4591_v39, %v2271_v2  ;;  %v2471_v25 = vrot.slane %v2469_v32, 1 }
 0x43f   : > { %vm2251_vm11 = vcmp.gt.f32.partialorder %v2187_v55, 0.0  ;;  %v2270_v3 = vmul.f32 0.2, %v2187_v55  ;;  %v2466_v23 = vrot.slane %v2464_v20, 1  ;;  %v2288_v27 = vsel %vm2250_vm8, %v2184_v43, %v2269_v0 }
 0x440   : > { %v2291_v7 = vsel %vm2253_vm9, %v4592_v26, %v2272_v17  ;;  %v2570_v41 = vrot.slane %v5640_v15, 1  ;;  %v2475_v51 = vor.u32 %v2473_v29, %v2471_v25 }
 0x441   : > { %v5648_v10 = vpack.c.bf16 %v2291_v7, %v2290_v33  ;;  %v2289_v34 = vsel %vm2251_vm11, %v2187_v55, %v2270_v3  ;;  %v2467_v50 = vor.u32 %v2466_v23, %v2462_v6 }
 0x442   : > { %v5651_v48 = vpack.c.bf16 %v2289_v34, %v2288_v27  ;;  %v2572_v37 = vsel %vm737_vm0, %v2570_v41, %v2571_v49  ;;  %v5671_v27 = vrot.slane %v379_v58, 2 }
 0x443   : > { %v4595_v44 = vpop.f32.mrb[20].mxu0  ;;  %v2472_v61 = vsel %vm627_vm1, %v2467_v50, %v2471_v25  ;;  %v2485_v16 = vshll.u32 %v5648_v10, 16  ;;  %v2575_v50 = vrot.slane %v5648_v10, 1 }
 0x444   : > { %v2275_v11 = vmul.f32 0.2, %v4595_v44  ;;  %2540 = vrot.lane.b32.xlu0 %v2472_v61, %s4851_s6  ;;  %v2200_v40 = vpop.f32.mrb[21].mxu0  ;;  %v2477_v24 = vshll.u32 %v5651_v48, 16  ;;  %vm2256_vm13 = vcmp.gt.f32.partialorder %v4595_v44, 0.0  ;;  %v2481_v39 = vshrl.u32 %v5651_v48, 16 }
 0x445   : > { %v2273_v12 = vmul.f32 0.2, %v2200_v40  ;;  %v4596_v13 = vpop.f32.mrb[22].mxu0  ;;  %vm2254_vm5 = vcmp.gt.f32.partialorder %v2200_v40, 0.0  ;;  %v2487_v26 = vrot.slane %v2485_v16, 1  ;;  %v2573_v20 = vrot.slane %v5651_v48, 1 }
 0x446   : > { %vm2257_vm6 = vcmp.gt.f32.partialorder %v4596_v13, 0.0  ;;  %v2276_v2 = vmul.f32 0.2, %v4596_v13  ;;  %v2203_v43 = vpop.f32.mrb[23].mxu0  ;;  %v2479_v32 = vrot.slane %v2477_v24, 1  ;;  %v2294_v17 = vsel %vm2256_vm13, %v4595_v44, %v2275_v11 }
 0x447   : > { %vm2255_vm14 = vcmp.gt.f32.partialorder %v2203_v43, 0.0  ;;  %v2274_v0 = vmul.f32 0.2, %v2203_v43  ;;  %v2292_v6 = vsel %vm2254_vm5, %v2200_v40, %v2273_v12  ;;  %v2574_v29 = vsel %vm737_vm0, %v2571_v49, %v2573_v20 }
 0x448   : > { %v2295_v55 = vsel %vm2257_vm6, %v4596_v13, %v2276_v2  ;;  %2589 = vrot.lane.b32.xlu0 %v2572_v37, %s4850_s5  ;;  %v2480_v52 = vsel %vm627_vm1, %v2475_v51, %v2479_v32  ;;  %v2483_v3 = vor.u32 %v2481_v39, %v2479_v32  ;;  %v2489_v44 = vshrl.u32 %v5648_v10, 16 }
 0x449   : > { %v5668_v23 = vpack.c.bf16 %v2295_v55, %v2294_v17  ;;  %v2293_v33 = vsel %vm2255_vm14, %v2203_v43, %v2274_v0  ;;  %2542 = vrot.lane.b32.xlu1 %v2480_v52, %s4851_s6  ;;  %v1493_v40 = vsel %vm1458_vm10, %v5329_v42, %v5671_v27  ;;  %v2576_v37 = vsel %vm737_vm0, %v2573_v20, %v2575_v50 }
 0x44a   : > { %v5673_v7 = vpack.c.bf16 %v2293_v33, %v2292_v6  ;;  %v2488_v25 = vsel %vm627_vm1, %v2483_v3, %v2487_v26  ;;  %v2491_v58 = vor.u32 %v2489_v44, %v2487_v26  ;;  %vm4853_vm14 = vmmov 0  }
 0x44b   : > { %v4599_v34 = vpop.f32.mrb[24].mxu0  ;;  %v2501_v16 = vshll.u32 %v5668_v23, 16  ;;  %v2579_v33 = vrot.slane %v5668_v23, 1 }
 0x44c   : > { %2544 = vrot.lane.b32.xlu0 %v2488_v25, %s4851_s6  ;;  %v2216_v41 = vpop.f32.mrb[25].mxu0  ;;  %v2493_v61 = vshll.u32 %v5673_v7, 16  ;;  %v2497_v49 = vshrl.u32 %v5673_v7, 16  ;;  %v2577_v42 = vrot.slane %v5673_v7, 1 }
 0x44d   : > { %2591 = vrot.lane.b32.xlu1 %v2574_v29, %s4850_s5  ;;  %v4600_v11 = vpop.f32.mrb[26].mxu0  ;;  %v2277_v51 = vmul.f32 0.2, %v2216_v41  ;;  %vm2258_vm7 = vcmp.gt.f32.partialorder %v2216_v41, 0.0  ;;  %v2503_v32 = vrot.slane %v2501_v16, 1 }
 0x44e   : > { %v2219_v24 = vpop.f32.mrb[27].mxu0  ;;  %v2495_v12 = vrot.slane %v2493_v61, 1  ;;  %v2578_v34 = vsel %vm737_vm0, %v2575_v50, %v2577_v42  ;;  %v2580_v44 = vsel %vm737_vm0, %v2577_v42, %v2579_v33 }
 0x44f   : > { %vm2259_vm8 = vcmp.gt.f32.partialorder %v2219_v24, 0.0  ;;  %v2278_v13 = vmul.f32 0.2, %v2219_v24  ;;  %v2296_v17 = vsel %vm2258_vm7, %v2216_v41, %v2277_v51  ;;  %v2505_v41 = vshrl.u32 %v5668_v23, 16 }
 0x450   : > { %2593 = vrot.lane.b32.xlu0 %v2576_v37, %s4850_s5  ;;  %v5690_v39 = vpop.f32.mrb[24].mxu1  ;;  %v2496_v2 = vsel %vm627_vm1, %v2491_v58, %v2495_v12  ;;  %v2499_v43 = vor.u32 %v2497_v49, %v2495_v12 }
 0x451   : > { %v2297_v0 = vsel %vm2259_vm8, %v2219_v24, %v2278_v13  ;;  %2546 = vrot.lane.b32.xlu1 %v2496_v2, %s4851_s6  ;;  %v1636_v26 = vpop.f32.mrb[25].mxu1  ;;  %v2507_v61 = vor.u32 %v2505_v41, %v2503_v32 }
 0x452   : > { %v2432_v55 = vsel %vm2356_vm15, %v2297_v0, 0.0  ;;  %v5697_v52 = vadd.f32 %v1636_v26, %v1493_v40  ;;  %v2504_v20 = vsel %vm627_vm1, %v2499_v43, %v2503_v32  ;;  %v4572_v3 = vpop.f32.mrb[26].mxu1 }
 0x453   : > { %v2457_v6 = vpack.c.bf16 %v2432_v55, %v2296_v17  ;;  %v1639_v24 = vpop.f32.mrb[27].mxu1 }
 0x454   : > { %v2736_v25 = vrot.slane %v5697_v52, 4  ;;  %2548 = vrot.lane.b32.xlu0 %v2504_v20, %s4851_s6 }
 0x455   : > { %2595 = vrot.lane.b32.xlu1 %v2578_v34, %s4850_s5  ;;  %v2509_v36 = vshll.u32 %v2457_v6, 16  ;;  %v2513_v11 = vshrl.u32 %v2457_v6, 16  ;;  %v2581_v51 = vrot.slane %v2457_v6, 1 }
 0x456   : > { %v5711_v29 = vsel %vm2704_vm12, %v2734_v28, %v2736_v25 }
 0x457   : > { %v2511_v16 = vrot.slane %v2509_v36, 1  ;;  %v2582_v28 = vsel %vm737_vm0, %v2579_v33, %v2581_v51  ;;  %v2584_v58 = vsel %vm737_vm0, %v2581_v51, %v4918_v8 }
 0x458   : > { %2597 = vrot.lane.b32.xlu0 %v2580_v44, %s4850_s5 }
 0x459   : > { %v2512_v50 = vsel %vm627_vm1, %v2507_v61, %v2511_v16  ;;  %v2515_v40 = vor.u32 %v2513_v11, %v2511_v16 }
 0x45a   : > { %2550 = vrot.lane.b32.xlu1 %v2512_v50, %s4851_s6 }
 0x45b   : > { %v2520_v38 = vsel %vm627_vm1, %v2515_v40, %v4929_v14 }
 0x45c   : > { %2552 = vrot.lane.b32.xlu0 %v2520_v38, %s4851_s6 }
 0x45e   : > { %2599 = vrot.lane.b32.xlu1 %v2582_v28, %s4850_s5 }
 0x460   : > { %2601 = vrot.lane.b32.xlu0 %v2584_v58, %s4850_s5 }
 0x462   : > { %2554 = vrot.lane.b32.xlu1 %v4929_v14, %s4851_s6 }
 0x464   : > { %1983 = vrot.lane.b32.xlu0 %v5559_v46, %s4851_s6 }
 0x466   : > { %2603 = vrot.lane.b32.xlu1 %v4918_v8, %s4850_s5 }
 0x468   : > { %2033 = vrot.lane.b32.xlu0 %v5568_v19, %s4850_s5 }
 0x46a   : > { %1985 = vrot.lane.b32.xlu1 %v5559_v46, %s4851_s6 }
 0x46e   : > { %2035 = vrot.lane.b32.xlu1 %v5568_v19, %s4850_s5 }
 0x4b6   : > { %v2541_v12 = vpop.permute.xlu0 %2540 }
 0x4b7   : > { %v2610_v49 = vsel %vm777_vm2, %v5640_v15, %v2541_v12 }
 0x4ba   : > { %v2590_v13 = vpop.permute.xlu0 %2589 }
 0x4bb   : > { %v2630_v37 = vsel %vm798_vm3, %v2610_v49, %v2590_v13  ;;  %v2543_v2 = vpop.permute.xlu1 %2542 }
 0x4bc   : > { %4617 = vmatprep.mubr.msk.bf16.mxu1 %vm855_vm4, %v2630_v37  ;;  %v2612_v32 = vsel %vm777_vm2, %v5637_v9, %v2543_v2 }
 0x4be   : > { %v2545_v43 = vpop.permute.xlu0 %2544 }
 0x4bf   : > { %v2592_v42 = vpop.permute.xlu1 %2591  ;;  %v2614_v19 = vsel %vm777_vm2, %v5651_v48, %v2545_v43 }
 0x4c0   : > { %v2632_v46 = vsel %vm798_vm3, %v2612_v32, %v2592_v42 }
 0x4c1   : > { %4618 = vmatmul.mubr.msk.bf16.vlgmr.msra.gmra.mrb[28].mxu1 %vm855_vm4, %v2632_v46  ;;  %v4812_v46 = vld [vmem:[%s6250_s2 + $0xc0] sm:$0xff]  }
 0x4c2   : > { %v2594_v0 = vpop.permute.xlu0 %2593  ;;  %4638 = vmatpush3.bf16.msra.mxu0 %v4812_v46 }
 0x4c3   : > { %v2634_v15 = vsel %vm798_vm3, %v2614_v19, %v2594_v0  ;;  %v2547_v26 = vpop.permute.xlu1 %2546  ;;  %4639 = vmatprep.subr.bf16.mxu0 %v4852_v56 }
 0x4c4   : > { %4621 = vmatprep.mubr.msk.bf16.mxu1 %vm855_vm4, %v2634_v15  ;;  %v2616_v55 = vsel %vm777_vm2, %v5648_v10, %v2547_v26 }
 0x4c6   : > { %v2549_v17 = vpop.permute.xlu0 %2548 }
 0x4c7   : > { %v2596_v20 = vpop.permute.xlu1 %2595  ;;  %v2618_v3 = vsel %vm777_vm2, %v5673_v7, %v2549_v17  ;;  %v4814_v17 = vld [vmem:[%s6250_s2 + $0xd0] sm:$0xff]  }
 0x4c8   : > { %v2636_v9 = vsel %vm798_vm3, %v2616_v55, %v2596_v20  ;;  %v4815_v55 = vld [vmem:[%s6250_s2 + $0xd8] sm:$0xff]   ;;  %v4816_v20 = vld [vmem:[%s6250_s2 + $0xe0] sm:$0xff]  }
 0x4c9   : > { %4622 = vmatmul.mubr.msk.bf16.gmra.mrb[32].mxu1 %vm855_vm4, %v2636_v9  ;;  %v4817_v9 = vld [vmem:[%s6250_s2 + $0xe8] sm:$0xff]  }
 0x4ca   : > { %v2598_v33 = vpop.permute.xlu0 %2597 }
 0x4cb   : > { %v2638_v48 = vsel %vm798_vm3, %v2618_v3, %v2598_v33 }
 0x4cc   : > { %v2551_v34 = vpop.permute.xlu1 %2550  ;;  %4625 = vmatprep.mubr.msk.bf16.mxu1 %vm855_vm4, %v2638_v48 }
 0x4cd   : > { %v2620_v36 = vsel %vm777_vm2, %v5668_v23, %v2551_v34  ;;  %v4805_v23 = vld [vmem:[%s5279_s28 + $0x8] sm:$0xff]  }
 0x4ce   : > { %v2553_v41 = vpop.permute.xlu0 %2552  ;;  %v380_v38 = vunpack.c.l.bf16 %v4805_v23  ;;  %v381_v28 = vunpack.c.h.bf16 %v4805_v23 }
 0x4cf   : > { %v2622_v61 = vsel %vm777_vm2, %v2457_v6, %v2553_v41  ;;  %v2953_v41 = vadd.s32 4294967286, %v5150_v21 }
 0x4d0   : > { %v2600_v10 = vpop.permute.xlu1 %2599  ;;  %v1494_v58 = vrot.slane %v380_v38, 2  ;;  %v1496_v6 = vrot.slane %v381_v28, 2 }
 0x4d1   : > { %v2640_v44 = vsel %vm798_vm3, %v2620_v36, %v2600_v10  ;;  %vm2972_vm13 = vcmp.ge.s32.totalorder %v2953_v41, 0 }
 0x4d2   : > { %v2602_v16 = vpop.permute.xlu0 %2601  ;;  %4626 = vmatmul.mubr.msk.bf16.gmra.mrb[36].mxu1 %vm855_vm4, %v2640_v44  ;;  %v1497_v12 = vsel %vm1458_vm10, %v1494_v58, %v1496_v6  ;;  %v1495_v49 = vsel %vm1458_vm10, %v5671_v27, %v1494_v58  ;;  %v4813_v27 = vld [vmem:[%s6250_s2 + $0xc8] sm:$0xff]  }
 0x4d3   : > { %v2642_v7 = vsel %vm798_vm3, %v2622_v61, %v2602_v16  ;;  %v1645_v13 = vadd.f32 %v5690_v39, %v1497_v12  ;;  %v1640_v37 = vadd.f32 %v1639_v24, %v1495_v49  ;;  %4640 = vmatpush3.bf16.msra.mxu0 %v4813_v27  ;;  %v5827_v12 = vadd.s32 4294967286, %v5645_v59 }
 0x4d4   : > { %v2555_v11 = vpop.permute.xlu1 %2554  ;;  %4629 = vmatprep.mubr.msk.bf16.mxu1 %vm855_vm4, %v2642_v7  ;;  %4641 = vmatprep.subr.bf16.mxu0 %v4852_v56 }
 0x4d5   : > { %v2624_v50 = vsel %vm777_vm2, 0.0|0.0, %v2555_v11  ;;  %v2740_v2 = vrot.slane %v1645_v13, 4  ;;  %v2738_v43 = vrot.slane %v1640_v37, 4 }
 0x4d6   : > { %v1984_v19 = vpop.permute.xlu0 %1983 }
 0x4d7   : > { %v5775_v32 = vsel %vm2704_vm12, %v2736_v25, %v2738_v43  ;;  %v5778_v42 = vsel %vm2704_vm12, %v2738_v43, %v2740_v2  ;;  %v2054_v39 = vsel %vm777_vm2, 0.0|0.0, %v1984_v19  ;;  %4642 = vmatpush3.bf16.msra.mxu0 %v4814_v17 }
 0x4d8   : > { %v2604_v40 = vpop.permute.xlu1 %2603  ;;  %4643 = vmatprep.subr.bf16.mxu0 %v4852_v56 }
 0x4d9   : > { %v2644_v51 = vsel %vm798_vm3, %v2624_v50, %v2604_v40 }
 0x4da   : > { %4630 = vmatmul.mubr.msk.bf16.gmra.mrb[40].mxu1 %vm855_vm4, %v2644_v51  ;;  %v2034_v25 = vpop.permute.xlu0 %2033 }
 0x4db   : > { %v2075_v15 = vsel %vm798_vm3, %v2054_v39, %v2034_v25  ;;  %4644 = vmatpush3.bf16.msra.mxu0 %v4815_v55 }
 0x4dc   : > { %v1986_v0 = vpop.permute.xlu1 %1985  ;;  %4601 = vmatprep.mubr.msk.bf16.mxu0 %vm855_vm4, %v2075_v15  ;;  %4645 = vmatprep.subr.bf16.mxu0 %v4852_v56 }
 0x4dd   : > { %v2057_v52 = vsel %vm777_vm2, 0.0|0.0, %v1986_v0 }
 0x4df   : > { %4646 = vmatpush3.bf16.msra.mxu0 %v4816_v20 }
 0x4e0   : > { %v2036_v24 = vpop.permute.xlu1 %2035  ;;  %4647 = vmatprep.subr.bf16.mxu0 %v4852_v56 }
 0x4e1   : > { %v2077_v26 = vsel %vm798_vm3, %v2057_v52, %v2036_v24 }
 0x4e2   : > { %4602 = vmatmul.mubr.msk.bf16.gmra.mrb[28].mxu0 %vm855_vm4, %v2077_v26 }
 0x4e3   : > { %4648 = vmatpush3.bf16.msra.mxu0 %v4817_v9  ;;  %4649 = vmatprep.mubr.msk.bf16.mxu0 %vm4853_vm14, %v4852_v56 }
 0x594   : > { %v4619_v3 = vpop.f32.mrb[28].mxu1 }
 0x595   : > { %v2824_v33 = vadd.f32 %v4619_v3, %v5334_v35  ;;  %v2815_v48 = vpop.f32.mrb[29].mxu1 }
 0x596   : > { %v4620_v34 = vpop.f32.mrb[30].mxu1 }
 0x597   : > { %v2914_v36 = vmul.f32 0.2, %v2824_v33  ;;  %v2827_v10 = vadd.f32 %v4620_v34, %v5440_v60  ;;  %v2818_v44 = vpop.f32.mrb[31].mxu1  ;;  %vm2895_vm12 = vcmp.gt.f32.partialorder %v2824_v33, 0.0  ;;  %v3860_v11 = vrot.slane %v2824_v33, 2 }
 0x598   : > { %v2819_v61 = vadd.f32 %v2818_v44, %v5343_v57 }
 0x599   : > { %vm2896_vm9 = vcmp.gt.f32.partialorder %v2827_v10, 0.0  ;;  %v2915_v16 = vmul.f32 0.2, %v2827_v10  ;;  %v3862_v7 = vrot.slane %v2827_v10, 2  ;;  %v2933_v35 = vsel %vm2895_vm12, %v2824_v33, %v2914_v36 }
 0x59a   : > { %vm2894_vm11 = vcmp.gt.f32.partialorder %v2819_v61, 0.0  ;;  %v2913_v50 = vmul.f32 0.2, %v2819_v61  ;;  %v3859_v40 = vrot.slane %v2819_v61, 2 }
 0x59b   : > { %v2934_v51 = vsel %vm2896_vm9, %v2827_v10, %v2915_v16  ;;  %v5814_v23 = vsel %vm1458_vm10, %v3860_v11, %v3862_v7 }
 0x59c   : > { %v2932_v21 = vsel %vm2894_vm11, %v2819_v61, %v2913_v50  ;;  %v4623_v38 = vpop.f32.mrb[32].mxu1  ;;  %v5816_v60 = vpack.c.bf16 %v2934_v51, %v2933_v35  ;;  %v5819_v28 = vsel %vm1458_vm10, %v3859_v40, %v3860_v11 }
 0x59d   : > { %v5821_v57 = vsel %vm2972_vm13, %v2932_v21, 0.0  ;;  %v5824_v58 = vadd.f32 %v4623_v38, %v5505_v4  ;;  %v2831_v6 = vpop.f32.mrb[33].mxu1  ;;  %vm3003_vm13 = vcmp.lt.s32.totalorder %v5827_v12, 100 }
 0x59e   : > { %v2832_v49 = vadd.f32 %v2831_v6, %v5518_v45  ;;  %v4624_v13 = vpop.f32.mrb[34].mxu1  ;;  %v3107_v37 = vpack.c.bf16 %v2933_v35, %v5821_v57  ;;  %v3216_v59 = vrot.slane %v5816_v60, 1 }
 0x59f   : > { %vm2899_vm5 = vcmp.gt.f32.partialorder %v5824_v58, 0.0  ;;  %v2918_v2 = vmul.f32 0.2, %v5824_v58  ;;  %v5834_v43 = vadd.f32 %v4624_v13, %v5521_v53  ;;  %v2834_v46 = vpop.f32.mrb[35].mxu1 }
 0x5a0   : > { %vm2897_vm6 = vcmp.gt.f32.partialorder %v2832_v49, 0.0  ;;  %v2916_v4 = vmul.f32 0.2, %v2832_v49  ;;  %v5837_v19 = vadd.f32 %v2834_v46, %v5524_v63  ;;  %v3121_v53 = vshll.u32 %v3107_v37, 16 }
 0x5a1   : > { %v2937_v45 = vsel %vm2899_vm5, %v5824_v58, %v2918_v2  ;;  %vm2900_vm15 = vcmp.gt.f32.partialorder %v5834_v43, 0.0  ;;  %v2919_v0 = vmul.f32 0.2, %v5834_v43  ;;  %v3864_v63 = vrot.slane %v2832_v49, 2 }
 0x5a2   : > { %v2935_v27 = vsel %vm2897_vm6, %v2832_v49, %v2916_v4  ;;  %vm2898_vm7 = vcmp.gt.f32.partialorder %v5837_v19, 0.0  ;;  %v2917_v39 = vmul.f32 0.2, %v5837_v19  ;;  %v3123_v24 = vrot.slane %v3121_v53, 1 }
 0x5a3   : > { %v2938_v52 = vsel %vm2900_vm15, %v5834_v43, %v2919_v0  ;;  %v3108_v25 = vpack.c.bf16 %v2935_v27, %v2934_v51  ;;  %v3866_v15 = vrot.slane %v5837_v19, 2  ;;  %v3119_v17 = vshrl.u32 %v3107_v37, 16 }
 0x5a4   : > { %v2936_v26 = vsel %vm2898_vm7, %v5837_v19, %v2917_v39  ;;  %v5850_v55 = vpack.c.bf16 %v2938_v52, %v2937_v45  ;;  %v5853_v20 = vsel %vm1458_vm10, %v3862_v7, %v3864_v63  ;;  %v3870_v34 = vrot.slane %v5834_v43, 2 }
 0x5a5   : > { %v4627_v9 = vpop.f32.mrb[36].mxu1  ;;  %v5855_v3 = vpack.c.bf16 %v2936_v26, %v2935_v27  ;;  %v3126_v33 = vshll.u32 %v3108_v25, 16  ;;  %v3109_v48 = vpack.c.bf16 %v2937_v45, %v2936_v26  ;;  %v3124_v10 = vor.u32 %v3123_v24, %v3119_v17 }
 0x5a6   : > { %v5859_v41 = vadd.f32 %v4627_v9, %v5527_v5  ;;  %v2847_v36 = vpop.f32.mrb[37].mxu1  ;;  %v3219_v44 = vrot.slane %v5850_v55, 1  ;;  %v5865_v61 = vsel %vm1458_vm10, %v3864_v63, %v3866_v15  ;;  %v3130_v40 = vshrl.u32 %v3108_v25, 16 }
 0x5a7   : > { %v5868_v16 = vadd.f32 %v2847_v36, %v5530_v30  ;;  %v4628_v7 = vpop.f32.mrb[38].mxu1  ;;  %v3217_v11 = vrot.slane %v5855_v3, 1  ;;  %v3128_v50 = vrot.slane %v3126_v33, 1  ;;  %v3134_v21 = vshll.u32 %v3109_v48, 16 }
 0x5a8   : > { %vm2903_vm8 = vcmp.gt.f32.partialorder %v5859_v41, 0.0  ;;  %v2922_v5 = vmul.f32 0.2, %v5859_v41  ;;  %v5874_v35 = vadd.f32 %v4628_v7, %v5543_v54  ;;  %v2850_v51 = vpop.f32.mrb[39].mxu1  ;;  %v3138_v13 = vshrl.u32 %v3109_v48, 16 }
 0x5a9   : > { %vm2901_vm12 = vcmp.gt.f32.partialorder %v5868_v16, 0.0  ;;  %v2920_v38 = vmul.f32 0.2, %v5868_v16  ;;  %v5879_v30 = vadd.f32 %v2850_v51, %v5536_v47  ;;  %v3218_v6 = vsel %vm737_vm0, %v3216_v59, %v3217_v11 }
 0x5aa   : > { %vm2904_vm9 = vcmp.gt.f32.partialorder %v5874_v35, 0.0  ;;  %v2923_v49 = vmul.f32 0.2, %v5874_v35  ;;  %3233 = vrot.lane.b32.xlu1 %v3218_v6, %s4850_s5  ;;  %v3129_v54 = vsel %vm627_vm1, %v3124_v10, %v3128_v50  ;;  %v2941_v37 = vsel %vm2903_vm8, %v5859_v41, %v2922_v5 }
 0x5ab   : > { %v2939_v2 = vsel %vm2901_vm12, %v5868_v16, %v2920_v38  ;;  %vm2902_vm11 = vcmp.gt.f32.partialorder %v5879_v30, 0.0  ;;  %v2921_v47 = vmul.f32 0.2, %v5879_v30  ;;  %3189 = vrot.lane.b32.xlu0 %v3129_v54, %s4851_s6  ;;  %v3132_v4 = vor.u32 %v3130_v40, %v3128_v50 }
 0x5ac   : > { %v2942_v46 = vsel %vm2904_vm9, %v5874_v35, %v2923_v49  ;;  %v3136_v59 = vrot.slane %v3134_v21, 1  ;;  %v3110_v45 = vpack.c.bf16 %v2939_v2, %v2938_v52  ;;  %v3220_v27 = vsel %vm737_vm0, %v3217_v11, %v3219_v44 }
 0x5ad   : > { %v2940_v0 = vsel %vm2902_vm11, %v5879_v30, %v2921_v47  ;;  %v4631_v53 = vpop.f32.mrb[40].mxu1  ;;  %v5895_v39 = vpack.c.bf16 %v2942_v46, %v2941_v37  ;;  %v3872_v63 = vrot.slane %v5868_v16, 2  ;;  %v3868_v52 = vrot.slane %v5824_v58, 2 }
 0x5ae   : > { %v5899_v25 = vadd.f32 %v4631_v53, %v5548_v22  ;;  %v2863_v24 = vpop.f32.mrb[41].mxu1  ;;  %3235 = vrot.lane.b32.xlu1 %v3220_v27, %s4850_s5  ;;  %v3137_v26 = vsel %vm627_vm1, %v3132_v4, %v3136_v59  ;;  %v5903_v17 = vpack.c.bf16 %v2940_v0, %v2939_v2  ;;  %v3142_v48 = vshll.u32 %v3110_v45, 16 }
 0x5af   : > { %v2864_v9 = vadd.f32 %v2863_v24, %v5551_v31  ;;  %3191 = vrot.lane.b32.xlu0 %v3137_v26, %s4851_s6  ;;  %v4632_v33 = vpop.f32.mrb[42].mxu1  ;;  %v3223_v36 = vrot.slane %v5895_v39, 1  ;;  %v3111_v10 = vpack.c.bf16 %v2941_v37, %v2940_v0  ;;  %v3140_v50 = vor.u32 %v3138_v13, %v3136_v59 }
 0x5b0   : > { %v3884_v22 = vrot.slane %v5899_v25, 2  ;;  %v5911_v16 = vadd.f32 %v4632_v33, %v5711_v29  ;;  %v2866_v7 = vpop.f32.mrb[43].mxu1  ;;  %v3221_v11 = vrot.slane %v5903_v17, 1  ;;  %v3144_v40 = vrot.slane %v3142_v48, 1 }
 0x5b1   : > { %vm2905_vm5 = vcmp.gt.f32.partialorder %v2864_v9, 0.0  ;;  %v2924_v58 = vmul.f32 0.2, %v2864_v9  ;;  %v2867_v31 = vadd.f32 %v2866_v7, %v5554_v62  ;;  %v3146_v21 = vshrl.u32 %v3110_v45, 16 }
 0x5b2   : > { %v3222_v5 = vsel %vm737_vm0, %v3219_v44, %v3221_v11  ;;  %v3224_v51 = vsel %vm737_vm0, %v3221_v11, %v3223_v36  ;;  %v3150_v38 = vshll.u32 %v3111_v10, 16  ;;  %v3145_v29 = vsel %vm627_vm1, %v3140_v50, %v3144_v40 }
 0x5b3   : > { %v2943_v6 = vsel %vm2905_vm5, %v2864_v9, %v2924_v58  ;;  %vm2906_vm6 = vcmp.gt.f32.partialorder %v2867_v31, 0.0  ;;  %v2925_v49 = vmul.f32 0.2, %v2867_v31  ;;  %3237 = vrot.lane.b32.xlu1 %v3222_v5, %s4850_s5  ;;  %3193 = vrot.lane.b32.xlu0 %v3145_v29, %s4851_s6  ;;  %v3148_v54 = vor.u32 %v3146_v21, %v3144_v40 }
 0x5b4   : > { %v3152_v13 = vrot.slane %v3150_v38, 1  ;;  %v3112_v37 = vpack.c.bf16 %v2943_v6, %v2942_v46  ;;  %v3154_v62 = vshrl.u32 %v3111_v10, 16  ;;  %v5923_v44 = vsel %vm1458_vm10, %v3870_v34, %v3872_v63 }
 0x5b5   : > { %v2944_v2 = vsel %vm2906_vm6, %v2867_v31, %v2925_v49  ;;  %v5928_v47 = vsel %vm1458_vm10, %v3866_v15, %v3868_v52  ;;  %v3874_v4 = vrot.slane %v5879_v30, 2  ;;  %v5945_v30 = vsel %vm1458_vm10, %v3868_v52, %v3870_v34 }
 0x5b6   : > { %v3153_v59 = vsel %vm627_vm1, %v3148_v54, %v3152_v13  ;;  %v3156_v45 = vor.u32 %v3154_v62, %v3152_v13  ;;  %v3158_v0 = vshll.u32 %v3112_v37, 16  ;;  %v3079_v46 = vsel %vm3003_vm13, %v2944_v2, 0.0  ;;  %v4603_v2 = vpop.f32.mrb[28].mxu0 }
 0x5b7   : > { %3239 = vrot.lane.b32.xlu1 %v3224_v51, %s4850_s5  ;;  %v5935_v53 = vpack.c.bf16 %v3079_v46, %v2943_v6  ;;  %v3113_v27 = vpack.c.bf16 %v4852_v56, %v3079_v46  ;;  %v3162_v25 = vshrl.u32 %v3112_v37, 16  ;;  %v5939_v19 = vsel %vm1458_vm10, %v3872_v63, %v3874_v4  ;;  %3195 = vrot.lane.b32.xlu0 %v3153_v59, %s4851_s6 }
 0x5b8   : > { %v3160_v15 = vrot.slane %v3158_v0, 1  ;;  %v3878_v12 = vrot.slane %v5874_v35, 2  ;;  %v3880_v24 = vrot.slane %v2864_v9, 2  ;;  %v3886_v26 = vrot.slane %v5911_v16, 2 }
 0x5b9   : > { %v3225_v33 = vrot.slane %v5935_v53, 1  ;;  %v3166_v48 = vshll.u32 %v3113_v27, 16  ;;  %v3876_v10 = vrot.slane %v5859_v41, 2  ;;  %v3882_v43 = vrot.slane %v2867_v31, 2 }
 0x5ba   : > { %v3161_v63 = vsel %vm627_vm1, %v3156_v45, %v3160_v15  ;;  %v3164_v7 = vor.u32 %v3162_v25, %v3160_v15  ;;  %v5953_v11 = vsel %vm1458_vm10, %v3878_v12, %v3880_v24  ;;  %v5974_v31 = vsel %vm1458_vm10, %v3884_v22, %v3886_v26 }
 0x5bb   : > { %v3226_v34 = vsel %vm737_vm0, %v3223_v36, %v3225_v33  ;;  %v3168_v52 = vrot.slane %v3166_v48, 1  ;;  %v5957_v35 = vsel %vm1458_vm10, %v3874_v4, %v3876_v10  ;;  %3197 = vrot.lane.b32.xlu0 %v3161_v63, %s4851_s6  ;;  %v5962_v9 = vsel %vm1458_vm10, %v3880_v24, %v3882_v43  ;;  %v2232_v4 = vpop.f32.mrb[29].mxu0 }
 0x5bc   : > { %3241 = vrot.lane.b32.xlu1 %v3226_v34, %s4850_s5  ;;  %v5965_v41 = vsel %vm1458_vm10, %v3876_v10, %v3878_v12  ;;  %v5968_v50 = vsel %vm1458_vm10, %v3882_v43, %v3884_v22  ;;  %v3170_v36 = vshrl.u32 %v3113_v27, 16  ;;  %v3228_v40 = vsel %vm737_vm0, %v3225_v33, %v4918_v8  ;;  %v4604_v59 = vpop.f32.mrb[30].mxu0 }
 0x5bd   : > { %v3169_v58 = vsel %vm627_vm1, %v3164_v7, %v3168_v52  ;;  %v3098_v21 = vpack.c.bf16 %v5821_v57, %v4852_v56  ;;  %v2235_v0 = vpop.f32.mrb[31].mxu0 }
 0x5be   : > { %v3172_v5 = vor.u32 %v3170_v36, %v3168_v52 }
 0x5bf   : > { %3199 = vrot.lane.b32.xlu0 %v3169_v58, %s4851_s6 }
 0x5c0   : > { %3243 = vrot.lane.b32.xlu1 %v3228_v40, %s4850_s5  ;;  %v3177_v51 = vsel %vm627_vm1, %v3172_v5, %v4929_v14 }
 0x5c3   : > { %3201 = vrot.lane.b32.xlu0 %v3177_v51, %s4851_s6 }
 0x5c4   : > { %3245 = vrot.lane.b32.xlu1 %v4918_v8, %s4850_s5 }
 0x5c7   : > { %4769 = vrot.lane.b32.xlu0 %v5131_v18, %s4851_s6 }
 0x5c8   : > { %2605 = vrot.lane.b32.xlu1 %v4918_v8, %s4850_s5 }
 0x5cb   : > { %2607 = vrot.lane.b32.xlu0 %v4918_v8, %s4850_s5 }
 0x61c   : > { %v3234_v22 = vpop.permute.xlu1 %3233 }
 0x61d   : > { %v3190_v38 = vpop.permute.xlu0 %3189 }
 0x61e   : > { %v3253_v6 = vsel %vm777_vm2, %v3098_v21, %v3190_v38 }
 0x61f   : > { %v3279_v49 = vsel %vm798_vm3, %v3253_v6, %v3234_v22  ;;  %v4819_v6 = vld [vmem:[%s6250_s2 + $0xf8] sm:$0xff]  }
 0x620   : > { %4650 = vmatmul.mubr.msk.bf16.vlgmr.msra.gmra.mrb[32].mxu0 %vm855_vm4, %v3279_v49  ;;  %v3236_v29 = vpop.permute.xlu1 %3235  ;;  %v3507_v49 = vadd.s32 4294967295, %v4894_v1 }
 0x621   : > { %v3192_v54 = vpop.permute.xlu0 %3191  ;;  %4653 = vmatprep.mubr.msk.bf16.mxu0 %vm4853_vm14, %v4852_v56 }
 0x622   : > { %v3256_v13 = vsel %vm777_vm2, %v5816_v60, %v3192_v54  ;;  %vm3524_vm7 = vcmp.ge.s32.totalorder %v3507_v49, 0 }
 0x623   : > { %v3281_v57 = vsel %vm798_vm3, %v3256_v13, %v3236_v29 }
 0x625   : > { %v3238_v37 = vpop.permute.xlu1 %3237  ;;  %v3194_v62 = vpop.permute.xlu0 %3193 }
 0x626   : > { %v3259_v27 = vsel %vm777_vm2, %v5855_v3, %v3194_v62 }
 0x627   : > { %v3283_v15 = vsel %vm798_vm3, %v3259_v27, %v3238_v37 }
 0x628   : > { %4654 = vmatmul.mubr.msk.bf16.gmra.mrb[36].mxu0 %vm855_vm4, %v3281_v57 }
 0x629   : > { %v3240_v45 = vpop.permute.xlu1 %3239  ;;  %4657 = vmatprep.mubr.msk.bf16.mxu0 %vm4853_vm14, %v4852_v56  ;;  %v3196_v46 = vpop.permute.xlu0 %3195 }
 0x62a   : > { %v3262_v33 = vsel %vm777_vm2, %v5850_v55, %v3196_v46 }
 0x62b   : > { %v3285_v63 = vsel %vm798_vm3, %v3262_v33, %v3240_v45  ;;  %v4821_v45 = vld [vmem:[%s6250_s2 + $0x108] sm:$0xff]  }
 0x62d   : > { %v3198_v25 = vpop.permute.xlu0 %3197 }
 0x62e   : > { %v3242_v60 = vpop.permute.xlu1 %3241  ;;  %v3265_v52 = vsel %vm777_vm2, %v5903_v17, %v3198_v25 }
 0x62f   : > { %v3287_v5 = vsel %vm798_vm3, %v3265_v52, %v3242_v60 }
 0x630   : > { %4658 = vmatmul.mubr.msk.bf16.gmra.mrb[40].mxu0 %vm855_vm4, %v3283_v15  ;;  %v4822_v15 = vld [vmem:[%s6250_s2 + $0x110] sm:$0xff]  }
 0x631   : > { %4661 = vmatprep.mubr.msk.bf16.mxu0 %vm4853_vm14, %v4852_v56  ;;  %v3200_v12 = vpop.permute.xlu0 %3199 }
 0x632   : > { %v3244_v24 = vpop.permute.xlu1 %3243  ;;  %v3268_v17 = vsel %vm777_vm2, %v5895_v39, %v3200_v12  ;;  %v4818_v39 = vld [vmem:[%s6250_s2 + $0xf0] sm:$0xff]  }
 0x633   : > { %v3289_v22 = vsel %vm798_vm3, %v3268_v17, %v3244_v24  ;;  %4685 = vmatprep.subr.bf16.mxu1 %v4818_v39 }
 0x634   : > { %4686 = vmatpush3.bf16.msra.mxu1 %v4818_v39 }
 0x635   : > { %v3202_v48 = vpop.permute.xlu0 %3201  ;;  %4687 = vmatprep.subr.bf16.mxu1 %v4819_v6 }
 0x636   : > { %v3246_v10 = vpop.permute.xlu1 %3245  ;;  %v3271_v21 = vsel %vm777_vm2, %v5935_v53, %v3202_v48  ;;  %v4820_v53 = vld [vmem:[%s6250_s2 + $0x100] sm:$0xff]  }
 0x637   : > { %v3291_v38 = vsel %vm798_vm3, %v3271_v21, %v3246_v10 }
 0x638   : > { %4662 = vmatmul.mubr.msk.bf16.gmra.mrb[44].mxu0 %vm855_vm4, %v3285_v63  ;;  %4688 = vmatpush3.bf16.msra.mxu1 %v4819_v6  ;;  %v4823_v63 = vld [vmem:[%s6250_s2 + $0x118] sm:$0xff]  }
 0x639   : > { %4665 = vmatprep.mubr.msk.bf16.mxu0 %vm4853_vm14, %v4852_v56  ;;  %v4770_v3 = vpop.permute.xlu0 %4769  ;;  %4689 = vmatprep.subr.bf16.mxu1 %v4820_v53 }
 0x63a   : > { %v4772_v7 = vunpack.i.h.bf16 %v4770_v3  ;;  %v4771_v43 = vunpack.i.l.bf16 %v4770_v3  ;;  %v2606_v34 = vpop.permute.xlu1 %2605 }
 0x63c   : > { %v2628_v58 = vsel %vm777_vm2, 0.0|0.0, %v4772_v7  ;;  %v2626_v55 = vsel %vm777_vm2, 0.0|0.0, %v4771_v43  ;;  %4690 = vmatpush3.bf16.msra.mxu1 %v4820_v53 }
 0x63d   : > { %v2646_v36 = vsel %vm798_vm3, %v2626_v55, %v2606_v34  ;;  %v2608_v40 = vpop.permute.xlu0 %2607  ;;  %4691 = vmatprep.subr.bf16.mxu1 %v4821_v45 }
 0x63e   : > { %v2648_v51 = vsel %vm798_vm3, %v2628_v58, %v2608_v40  ;;  %4633 = vmatprep.mubr.msk.bf16.mxu1 %vm855_vm4, %v2646_v36 }
 0x63f   : > { %4634 = vmatmul.mubr.msk.bf16.gmra.mrb[44].mxu1 %vm855_vm4, %v2648_v51 }
 0x640   : > { %4666 = vmatmul.mubr.msk.bf16.gmra.mrb[48].mxu0 %vm855_vm4, %v3287_v5  ;;  %4692 = vmatpush3.bf16.msra.mxu1 %v4821_v45 }
 0x641   : > { %4669 = vmatprep.mubr.msk.bf16.mxu0 %vm4853_vm14, %v4852_v56  ;;  %4693 = vmatprep.subr.bf16.mxu1 %v4822_v15 }
 0x644   : > { %4694 = vmatpush3.bf16.msra.mxu1 %v4822_v15 }
 0x645   : > { %4695 = vmatprep.subr.bf16.mxu1 %v4823_v63 }
 0x648   : > { %4670 = vmatmul.mubr.msk.bf16.gmra.mrb[52].mxu0 %vm855_vm4, %v3289_v22  ;;  %4696 = vmatpush3.bf16.msra.mxu1 %v4823_v63 }
 0x649   : > { %4673 = vmatprep.mubr.msk.bf16.mxu0 %vm4853_vm14, %v4852_v56 }
 0x650   : > { %4674 = vmatmul.mubr.msk.bf16.gmra.mrb[56].mxu0 %vm855_vm4, %v3291_v38 }
 0x651   : > { %4677 = vmatprep.mubr.msk.bf16.mxu0 %vm4853_vm14, %v4852_v56 }
 0x6f3   : > { %v3384_v29 = vpop.f32.mrb[32].mxu0 }
 0x6f4   : > { %vm3454_vm15 = vcmp.gt.f32.partialorder %v3384_v29, 0.0  ;;  %v3471_v54 = vmul.f32 0.2, %v3384_v29  ;;  %v4651_v13 = vpop.f32.mrb[33].mxu0 }
 0x6f5   : > { %v3387_v37 = vpop.f32.mrb[34].mxu0 }
 0x6f6   : > { %v3488_v62 = vsel %vm3454_vm15, %v3384_v29, %v3471_v54  ;;  %vm3455_vm8 = vcmp.gt.f32.partialorder %v3387_v37, 0.0  ;;  %v3472_v2 = vmul.f32 0.2, %v3387_v37  ;;  %v4652_v57 = vpop.f32.mrb[35].mxu0 }
 0x6f7   : > { %v3609_v4 = vsel %vm3524_vm7, %v3488_v62, 0.0 }
 0x6f8   : > { %v3489_v59 = vsel %vm3455_vm8, %v3387_v37, %v3472_v2 }
 0x6f9   : > { %v6053_v0 = vpack.c.bf16 %v3489_v59, %v3609_v4 }
 0x6fb   : > { %v3392_v46 = vpop.f32.mrb[36].mxu0  ;;  %v3651_v33 = vshll.u32 %v6053_v0, 16  ;;  %v3741_v43 = vrot.slane %v6053_v0, 1  ;;  %v3649_v51 = vshrl.u32 %v6053_v0, 16 }
 0x6fc   : > { %v3473_v27 = vmul.f32 0.2, %v3392_v46  ;;  %v4655_v25 = vpop.f32.mrb[37].mxu0  ;;  %vm3456_vm12 = vcmp.gt.f32.partialorder %v3392_v46, 0.0 }
 0x6fd   : > { %v3395_v60 = vpop.f32.mrb[38].mxu0  ;;  %v3653_v52 = vrot.slane %v3651_v33, 1 }
 0x6fe   : > { %vm3457_vm9 = vcmp.gt.f32.partialorder %v3395_v60, 0.0  ;;  %v3474_v12 = vmul.f32 0.2, %v3395_v60  ;;  %v4656_v24 = vpop.f32.mrb[39].mxu0  ;;  %v3490_v48 = vsel %vm3456_vm12, %v3392_v46, %v3473_v27 }
 0x6ff   : > { %v3654_v38 = vor.u32 %v3653_v52, %v3649_v51 }
 0x700   : > { %v3491_v10 = vsel %vm3457_vm9, %v3395_v60, %v3474_v12 }
 0x701   : > { %v6062_v3 = vpack.c.bf16 %v3491_v10, %v3490_v48 }
 0x703   : > { %v3400_v7 = vpop.f32.mrb[40].mxu0  ;;  %v3742_v34 = vrot.slane %v6062_v3, 1  ;;  %v3656_v58 = vshll.u32 %v6062_v3, 16  ;;  %v3660_v4 = vshrl.u32 %v6062_v3, 16 }
 0x704   : > { %v3475_v55 = vmul.f32 0.2, %v3400_v7  ;;  %v4659_v36 = vpop.f32.mrb[41].mxu0  ;;  %vm3458_vm11 = vcmp.gt.f32.partialorder %v3400_v7, 0.0 }
 0x705   : > { %v3403_v40 = vpop.f32.mrb[42].mxu0  ;;  %v3743_v5 = vsel %vm737_vm0, %v3741_v43, %v3742_v34  ;;  %v3658_v17 = vrot.slane %v3656_v58, 1 }
 0x706   : > { %vm3459_vm13 = vcmp.gt.f32.partialorder %v3403_v40, 0.0  ;;  %v3476_v22 = vmul.f32 0.2, %v3403_v40  ;;  %3758 = vrot.lane.b32.xlu1 %v3743_v5, %s4850_s5  ;;  %v4660_v21 = vpop.f32.mrb[43].mxu0  ;;  %v3492_v39 = vsel %vm3458_vm11, %v3400_v7, %v3475_v55 }
 0x707   : > { %v3659_v49 = vsel %vm627_vm1, %v3654_v38, %v3658_v17  ;;  %v3662_v27 = vor.u32 %v3660_v4, %v3658_v17  ;;  %v456_v4 = vadd.s32 96, %v4894_v1 }
 0x708   : > { %v3493_v6 = vsel %vm3459_vm13, %v3403_v40, %v3476_v22 }
 0x709   : > { %v6070_v53 = vpack.c.bf16 %v3493_v6, %v3492_v39 }
 0x70a   : > { %3716 = vrot.lane.b32.xlu1 %v3659_v49, %s4851_s6 }
 0x70b   : > { %v3408_v29 = vpop.f32.mrb[44].mxu0  ;;  %v3744_v54 = vrot.slane %v6070_v53, 1  ;;  %v3664_v13 = vshll.u32 %v6070_v53, 16 }
 0x70c   : > { %v3477_v37 = vmul.f32 0.2, %v3408_v29  ;;  %v4663_v62 = vpop.f32.mrb[45].mxu0  ;;  %vm3460_vm5 = vcmp.gt.f32.partialorder %v3408_v29, 0.0 }
 0x70d   : > { %v3411_v2 = vpop.f32.mrb[46].mxu0  ;;  %v3745_v57 = vsel %vm737_vm0, %v3742_v34, %v3744_v54  ;;  %v3666_v59 = vrot.slane %v3664_v13, 1  ;;  %v3668_v34 = vshrl.u32 %v6070_v53, 16 }
 0x70e   : > { %vm3461_vm6 = vcmp.gt.f32.partialorder %v3411_v2, 0.0  ;;  %v3478_v45 = vmul.f32 0.2, %v3411_v2  ;;  %3760 = vrot.lane.b32.xlu0 %v3745_v57, %s4850_s5  ;;  %v4664_v46 = vpop.f32.mrb[47].mxu0  ;;  %v3494_v25 = vsel %vm3460_vm5, %v3408_v29, %v3477_v37 }
 0x70f   : > { %v3667_v12 = vsel %vm627_vm1, %v3662_v27, %v3666_v59  ;;  %v3670_v38 = vor.u32 %v3668_v34, %v3666_v59 }
 0x710   : > { %v3495_v60 = vsel %vm3461_vm6, %v3411_v2, %v3478_v45 }
 0x711   : > { %v6079_v15 = vpack.c.bf16 %v3495_v60, %v3494_v25 }
 0x712   : > { %3718 = vrot.lane.b32.xlu0 %v3667_v12, %s4851_s6  ;;  %v4635_v24 = vpop.f32.mrb[44].mxu1 }
 0x713   : > { %v3416_v33 = vpop.f32.mrb[48].mxu0  ;;  %v3746_v48 = vrot.slane %v6079_v15, 1  ;;  %v3672_v10 = vshll.u32 %v6079_v15, 16  ;;  %v2879_v7 = vpop.f32.mrb[45].mxu1  ;;  %v3519_v24 = vadd.s32 4294967295, %v456_v4 }
 0x714   : > { %v3479_v63 = vmul.f32 0.2, %v3416_v33  ;;  %v4667_v43 = vpop.f32.mrb[49].mxu0  ;;  %vm3462_vm15 = vcmp.gt.f32.partialorder %v3416_v33, 0.0  ;;  %v2880_v52 = vadd.f32 %v2879_v7, %v5775_v32  ;;  %v4636_v58 = vpop.f32.mrb[46].mxu1 }
 0x715   : > { %v3419_v55 = vpop.f32.mrb[50].mxu0  ;;  %v3747_v36 = vsel %vm737_vm0, %v3744_v54, %v3746_v48  ;;  %v3674_v40 = vrot.slane %v3672_v10, 1  ;;  %v2882_v51 = vpop.f32.mrb[47].mxu1  ;;  %vm3553_vm9 = vcmp.lt.s32.totalorder %v3519_v24, 100 }
 0x716   : > { %vm3463_vm7 = vcmp.gt.f32.partialorder %v3419_v55, 0.0  ;;  %v3480_v5 = vmul.f32 0.2, %v3419_v55  ;;  %3762 = vrot.lane.b32.xlu1 %v3747_v36, %s4850_s5  ;;  %v4668_v17 = vpop.f32.mrb[51].mxu0  ;;  %v3888_v22 = vrot.slane %v2880_v52, 2  ;;  %v2883_v21 = vadd.f32 %v2882_v51, %v5778_v42 }
 0x717   : > { %v3496_v39 = vsel %vm3462_vm15, %v3416_v33, %v3479_v63  ;;  %v3675_v29 = vsel %vm627_vm1, %v3670_v38, %v3674_v40 }
 0x718   : > { %v3497_v6 = vsel %vm3463_vm7, %v3419_v55, %v3480_v5  ;;  %v3890_v32 = vrot.slane %v2883_v21, 2  ;;  %v6096_v54 = vsel %vm1458_vm10, %v3886_v26, %v3888_v22  ;;  %v3676_v26 = vshrl.u32 %v6079_v15, 16 }
 0x719   : > { %v6090_v49 = vpack.c.bf16 %v3497_v6, %v3496_v39 }
 0x71a   : > { %3720 = vrot.lane.b32.xlu1 %v3675_v29, %s4851_s6  ;;  %v6102_v62 = vsel %vm1458_vm10, %v3888_v22, %v3890_v32  ;;  %v3678_v25 = vor.u32 %v3676_v26, %v3674_v40 }
 0x71b   : > { %v3424_v13 = vpop.f32.mrb[52].mxu0  ;;  %v3748_v37 = vrot.slane %v6090_v49, 1  ;;  %v3680_v42 = vshll.u32 %v6090_v49, 16  ;;  %v3684_v58 = vshrl.u32 %v6090_v49, 16 }
 0x71c   : > { %v3481_v2 = vmul.f32 0.2, %v3424_v13  ;;  %v4671_v57 = vpop.f32.mrb[53].mxu0  ;;  %vm3464_vm8 = vcmp.gt.f32.partialorder %v3424_v13, 0.0 }
 0x71d   : > { %v3427_v59 = vpop.f32.mrb[54].mxu0  ;;  %v3749_v16 = vsel %vm737_vm0, %v3746_v48, %v3748_v37  ;;  %v3682_v45 = vrot.slane %v3680_v42, 1 }
 0x71e   : > { %vm3465_vm12 = vcmp.gt.f32.partialorder %v3427_v59, 0.0  ;;  %v3482_v46 = vmul.f32 0.2, %v3427_v59  ;;  %3764 = vrot.lane.b32.xlu0 %v3749_v16, %s4850_s5  ;;  %v4672_v27 = vpop.f32.mrb[55].mxu0  ;;  %v3498_v60 = vsel %vm3464_vm8, %v3424_v13, %v3481_v2 }
 0x71f   : > { %v3683_v1 = vsel %vm627_vm1, %v3678_v25, %v3682_v45  ;;  %v3686_v51 = vor.u32 %v3684_v58, %v3682_v45 }
 0x720   : > { %v3499_v12 = vsel %vm3465_vm12, %v3427_v59, %v3482_v46 }
 0x721   : > { %v6108_v33 = vpack.c.bf16 %v3499_v12, %v3498_v60 }
 0x722   : > { %3722 = vrot.lane.b32.xlu0 %v3683_v1, %s4851_s6 }
 0x723   : > { %v3432_v10 = vpop.f32.mrb[56].mxu0  ;;  %v3750_v48 = vrot.slane %v6108_v33, 1  ;;  %v3688_v63 = vshll.u32 %v6108_v33, 16  ;;  %v3692_v6 = vshrl.u32 %v6108_v33, 16 }
 0x724   : > { %vm3466_vm10 = vcmp.gt.f32.partialorder %v3432_v10, 0.0  ;;  %v3483_v7 = vmul.f32 0.2, %v3432_v10  ;;  %v4675_v43 = vpop.f32.mrb[57].mxu0 }
 0x725   : > { %v3435_v34 = vpop.f32.mrb[58].mxu0  ;;  %v3751_v52 = vsel %vm737_vm0, %v3748_v37, %v3750_v48  ;;  %v3690_v55 = vrot.slane %v3688_v63, 1 }
 0x726   : > { %v3500_v36 = vsel %vm3466_vm10, %v3432_v10, %v3483_v7  ;;  %3766 = vrot.lane.b32.xlu1 %v3751_v52, %s4850_s5  ;;  %v4676_v40 = vpop.f32.mrb[59].mxu0 }
 0x727   : > { %v3621_v5 = vsel %vm3553_vm9, %v3500_v36, 0.0  ;;  %v3691_v22 = vsel %vm627_vm1, %v3686_v51, %v3690_v55  ;;  %v3694_v13 = vor.u32 %v3692_v6, %v3690_v55 }
 0x728   : > { %v6118_v17 = vpack.c.bf16 %v4852_v56, %v3621_v5 }
 0x72a   : > { %3724 = vrot.lane.b32.xlu1 %v3691_v22, %s4851_s6  ;;  %v3752_v21 = vrot.slane %v6118_v17, 1  ;;  %v3696_v38 = vshll.u32 %v6118_v17, 16  ;;  %v3700_v29 = vshrl.u32 %v6118_v17, 16 }
 0x72c   : > { %v3753_v39 = vsel %vm737_vm0, %v3750_v48, %v3752_v21  ;;  %v3698_v32 = vrot.slane %v3696_v38, 1 }
 0x72d   : > { %3768 = vrot.lane.b32.xlu0 %v3753_v39, %s4850_s5 }
 0x72e   : > { %4774 = vrot.lane.b32.xlu1 %v5131_v18, %s4851_s6  ;;  %v3702_v37 = vor.u32 %v3700_v29, %v3698_v32  ;;  %v3699_v42 = vsel %vm627_vm1, %v3694_v13, %v3698_v32  ;;  %v3755_v18 = vsel %vm737_vm0, %v3752_v21, %v4918_v8  ;;  %vm4085_vm0 = vcmask 257024  }
 0x730   : > { %v3707_v2 = vsel %vm627_vm1, %v3702_v37, %v4929_v14 }
 0x731   : > { %3726 = vrot.lane.b32.xlu0 %v3699_v42, %s4851_s6 }
 0x732   : > { %3728 = vrot.lane.b32.xlu1 %v3707_v2, %s4851_s6 }
 0x735   : > { %3247 = vrot.lane.b32.xlu0 %v4918_v8, %s4850_s5 }
 0x736   : > { %3772 = vrot.lane.b32.xlu1 %v4918_v8, %s4850_s5 }
 0x739   : > { %3770 = vrot.lane.b32.xlu0 %v3755_v18, %s4850_s5 }
 0x73a   : > { %3249 = vrot.lane.b32.xlu1 %v4918_v8, %s4850_s5  ;;  %s4399_s5 = sshll.u32 %s6257_s12, 6 }
 0x73b   : > { %s6190_s10 = scalar_lea.vmem %s6251_s3, %s4399_s5 }
 0x73d   : > { %3205 = vrot.lane.b32.xlu0 %v4929_v14, %s4851_s6 }
 0x778   : > { %v3759_v57 = vpop.permute.xlu1 %3758 }
 0x77c   : > { %v3717_v4 = vpop.permute.xlu1 %3716 }
 0x77d   : > { %v3775_v59 = vsel %vm777_vm2, %v6053_v0, %v3717_v4 }
 0x77e   : > { %v3791_v16 = vsel %vm798_vm3, %v3775_v59, %v3759_v57 }
 0x77f   : > { %4697 = vmatprep.mubr.msk.bf16.mxu1 %vm855_vm4, %v3791_v16 }
 0x780   : > { %v3761_v26 = vpop.permute.xlu0 %3760 }
 0x784   : > { %v3719_v45 = vpop.permute.xlu0 %3718 }
 0x785   : > { %v3777_v46 = vsel %vm777_vm2, %v6062_v3, %v3719_v45 }
 0x786   : > { %v3793_v27 = vsel %vm798_vm3, %v3777_v46, %v3761_v26 }
 0x787   : > { %4698 = vmatmul.mubr.msk.bf16.vlgmr.msra.gmra.mrb[48].mxu1 %vm855_vm4, %v3793_v27 }
 0x788   : > { %v3763_v8 = vpop.permute.xlu1 %3762 }
 0x78c   : > { %v3721_v14 = vpop.permute.xlu1 %3720 }
 0x78d   : > { %v3779_v25 = vsel %vm777_vm2, %v6070_v53, %v3721_v14 }
 0x78e   : > { %v3795_v0 = vsel %vm798_vm3, %v3779_v25, %v3763_v8 }
 0x78f   : > { %4701 = vmatprep.mubr.msk.bf16.mxu1 %vm855_vm4, %v3795_v0 }
 0x790   : > { %v3765_v60 = vpop.permute.xlu0 %3764 }
 0x794   : > { %v3723_v12 = vpop.permute.xlu0 %3722 }
 0x795   : > { %v3781_v24 = vsel %vm777_vm2, %v6079_v15, %v3723_v12 }
 0x796   : > { %v3797_v3 = vsel %vm798_vm3, %v3781_v24, %v3765_v60 }
 0x797   : > { %4702 = vmatmul.mubr.msk.bf16.gmra.mrb[52].mxu1 %vm855_vm4, %v3797_v3 }
 0x798   : > { %v3767_v1 = vpop.permute.xlu1 %3766 }
 0x79c   : > { %v3725_v10 = vpop.permute.xlu1 %3724 }
 0x79d   : > { %v3783_v48 = vsel %vm777_vm2, %v6090_v49, %v3725_v10 }
 0x79e   : > { %v3799_v53 = vsel %vm798_vm3, %v3783_v48, %v3767_v1 }
 0x79f   : > { %4705 = vmatprep.mubr.msk.bf16.mxu1 %vm855_vm4, %v3799_v53  ;;  %v3769_v63 = vpop.permute.xlu0 %3768 }
 0x7a0   : > { %v4775_v7 = vpop.permute.xlu1 %4774 }
 0x7a1   : > { %v4776_v43 = vunpack.i.l.bf16 %v4775_v7  ;;  %v4777_v36 = vunpack.i.h.bf16 %v4775_v7 }
 0x7a3   : > { %v3727_v34 = vpop.permute.xlu0 %3726  ;;  %v3274_v58 = vsel %vm777_vm2, 0.0|0.0, %v4776_v43  ;;  %v3789_v5 = vsel %vm777_vm2, 0.0|0.0, %v4777_v36 }
 0x7a4   : > { %v3785_v15 = vsel %vm777_vm2, %v6108_v33, %v3727_v34  ;;  %v3729_v52 = vpop.permute.xlu1 %3728 }
 0x7a5   : > { %v3801_v55 = vsel %vm798_vm3, %v3785_v15, %v3769_v63  ;;  %v3787_v33 = vsel %vm777_vm2, %v6118_v17, %v3729_v52 }
 0x7a6   : > { %4706 = vmatmul.mubr.msk.bf16.gmra.mrb[56].mxu1 %vm855_vm4, %v3801_v55 }
 0x7a7   : > { %v3248_v49 = vpop.permute.xlu0 %3247 }
 0x7a8   : > { %v3293_v40 = vsel %vm798_vm3, %v3274_v58, %v3248_v49  ;;  %v3773_v51 = vpop.permute.xlu1 %3772 }
 0x7a9   : > { %4678 = vmatmul.mubr.msk.bf16.gmra.mrb[60].mxu0 %vm855_vm4, %v3293_v40  ;;  %v3805_v38 = vsel %vm798_vm3, %v3789_v5, %v3773_v51 }
 0x7aa   : > { %4681 = vmatprep.mubr.msk.bf16.mxu0 %vm4853_vm14, %v4852_v56 }
 0x7ab   : > { %v3771_v22 = vpop.permute.xlu0 %3770 }
 0x7ac   : > { %v3803_v21 = vsel %vm798_vm3, %v3787_v33, %v3771_v22  ;;  %v3250_v39 = vpop.permute.xlu1 %3249 }
 0x7ad   : > { %4709 = vmatprep.mubr.msk.bf16.mxu1 %vm855_vm4, %v3803_v21 }
 0x7ae   : > { %4710 = vmatmul.mubr.msk.bf16.gmra.mrb[60].mxu1 %vm855_vm4, %v3805_v38 }
 0x7af   : > { %v3206_v6 = vpop.permute.xlu0 %3205 }
 0x7b0   : > { %v3277_v32 = vsel %vm777_vm2, 0.0|0.0, %v3206_v6 }
 0x7b1   : > { %v3295_v29 = vsel %vm798_vm3, %v3277_v32, %v3250_v39 }
 0x7b2   : > { %4682 = vmatmul.mubr.msk.bf16.gmra.mrb[64].mxu0 %vm855_vm4, %v3295_v29 }
 0x85a   : > { %v4699_v56 = vpop.f32.mrb[48].mxu1 }
 0x85b   : > { %v3967_v17 = vadd.f32 %v4699_v56, %v5853_v20  ;;  %v3958_v13 = vpop.f32.mrb[49].mxu1 }
 0x85c   : > { %v3959_v37 = vadd.f32 %v3958_v13, %v5819_v28  ;;  %v4700_v42 = vpop.f32.mrb[50].mxu1 }
 0x85d   : > { %v4402_v2 = vpack.c.bf16 %v3967_v17, %v3967_v17  ;;  %v3970_v18 = vadd.f32 %v4700_v42, %v5865_v61  ;;  %v3961_v57 = vpop.f32.mrb[51].mxu1 }
 0x85e   : > { %v4400_v4 = vpack.c.bf16 %v3959_v37, %v3959_v37  ;;  %v3962_v20 = vadd.f32 %v3961_v57, %v5814_v23 }
 0x85f   : > { %4088 = vst.msk [vmem:[%s6190_s10 + $0x8] sm:$0xf] %vm4085_vm0, %v4402_v2  ;;  %v4403_v59 = vpack.c.bf16 %v3970_v18, %v3970_v18 }
 0x860   : > { %4086 = vst.msk [vmem:[%s6190_s10] sm:$0xf] %vm4085_vm0, %v4400_v4  ;;  %v4401_v16 = vpack.c.bf16 %v3962_v20, %v3962_v20 }
 0x861   : > { %4089 = vst.msk [vmem:[%s6190_s10 + $0xc] sm:$0xf] %vm4085_vm0, %v4403_v59 }
 0x862   : > { %4087 = vst.msk [vmem:[%s6190_s10 + $0x4] sm:$0xf] %vm4085_vm0, %v4401_v16 }
 0x86a   : > { %v4703_v28 = vpop.f32.mrb[52].mxu1 }
 0x86b   : > { %v3983_v61 = vadd.f32 %v4703_v28, %v5923_v44  ;;  %v3974_v26 = vpop.f32.mrb[53].mxu1 }
 0x86c   : > { %v3975_v23 = vadd.f32 %v3974_v26, %v5928_v47  ;;  %v4704_v45 = vpop.f32.mrb[54].mxu1 }
 0x86d   : > { %v4406_v46 = vpack.c.bf16 %v3983_v61, %v3983_v61  ;;  %v3986_v27 = vadd.f32 %v4704_v45, %v5939_v19  ;;  %v3977_v8 = vpop.f32.mrb[55].mxu1 }
 0x86e   : > { %v4404_v14 = vpack.c.bf16 %v3975_v23, %v3975_v23  ;;  %v3978_v25 = vadd.f32 %v3977_v8, %v5945_v30 }
 0x86f   : > { %4092 = vst.msk [vmem:[%s6190_s10 + $0x18] sm:$0xf] %vm4085_vm0, %v4406_v46  ;;  %v4407_v0 = vpack.c.bf16 %v3986_v27, %v3986_v27 }
 0x870   : > { %4090 = vst.msk [vmem:[%s6190_s10 + $0x10] sm:$0xf] %vm4085_vm0, %v4404_v14  ;;  %v4405_v60 = vpack.c.bf16 %v3978_v25, %v3978_v25 }
 0x871   : > { %4093 = vst.msk [vmem:[%s6190_s10 + $0x1c] sm:$0xf] %vm4085_vm0, %v4407_v0 }
 0x872   : > { %4091 = vst.msk [vmem:[%s6190_s10 + $0x14] sm:$0xf] %vm4085_vm0, %v4405_v60 }
 0x879   : > { %v4707_v44 = vpop.f32.mrb[56].mxu1 }
 0x87a   : > { %v3999_v47 = vadd.f32 %v4707_v44, %v5953_v11  ;;  %v3990_v19 = vpop.f32.mrb[57].mxu1 }
 0x87b   : > { %v3991_v12 = vadd.f32 %v3990_v19, %v5957_v35  ;;  %v4708_v30 = vpop.f32.mrb[58].mxu1 }
 0x87c   : > { %v4410_v24 = vpack.c.bf16 %v3999_v47, %v3999_v47  ;;  %v4002_v3 = vadd.f32 %v4708_v30, %v5962_v9  ;;  %v3440_v1 = vpop.f32.mrb[60].mxu0  ;;  %v3993_v10 = vpop.f32.mrb[59].mxu1 }
 0x87d   : > { %v4408_v48 = vpack.c.bf16 %v3991_v12, %v3991_v12  ;;  %v3994_v53 = vadd.f32 %v3993_v10, %v5965_v41  ;;  %v4679_v63 = vpop.f32.mrb[61].mxu0 }
 0x87e   : > { %4096 = vst.msk [vmem:[%s6190_s10 + $0x28] sm:$0xf] %vm4085_vm0, %v4410_v24  ;;  %v4411_v7 = vpack.c.bf16 %v4002_v3, %v4002_v3  ;;  %v3443_v43 = vpop.f32.mrb[62].mxu0 }
 0x87f   : > { %4094 = vst.msk [vmem:[%s6190_s10 + $0x20] sm:$0xf] %vm4085_vm0, %v4408_v48  ;;  %v4409_v11 = vpack.c.bf16 %v3994_v53, %v3994_v53  ;;  %v4680_v35 = vpop.f32.mrb[63].mxu0 }
 0x880   : > { %4097 = vst.msk [vmem:[%s6190_s10 + $0x2c] sm:$0xf] %vm4085_vm0, %v4411_v7 }
 0x881   : > { %4095 = vst.msk [vmem:[%s6190_s10 + $0x24] sm:$0xf] %vm4085_vm0, %v4409_v11  ;;  %v4711_v9 = vpop.f32.mrb[60].mxu1 }
 0x882   : > { %v4015_v34 = vadd.f32 %v4711_v9, %v6096_v54  ;;  %v4006_v41 = vpop.f32.mrb[61].mxu1 }
 0x883   : > { %v4007_v15 = vadd.f32 %v4006_v41, %v5968_v50  ;;  %v4712_v52 = vpop.f32.mrb[62].mxu1 }
 0x884   : > { %v4414_v58 = vpack.c.bf16 %v4015_v34, %v4015_v34  ;;  %v4018_v55 = vadd.f32 %v4712_v52, %v6102_v62  ;;  %v4009_v36 = vpop.f32.mrb[63].mxu1 }
 0x885   : > { %v4412_v49 = vpack.c.bf16 %v4007_v15, %v4007_v15  ;;  %v4010_v40 = vadd.f32 %v4009_v36, %v5974_v31  ;;  %v3448_v5 = vpop.f32.mrb[64].mxu0 }
 0x886   : > { %4100 = vst.msk [vmem:[%s6190_s10 + $0x38] sm:$0xf] %vm4085_vm0, %v4414_v58  ;;  %v4415_v51 = vpack.c.bf16 %v4018_v55, %v4018_v55  ;;  %v4683_v33 = vpop.f32.mrb[65].mxu0 }
 0x887   : > { %4098 = vst.msk [vmem:[%s6190_s10 + $0x30] sm:$0xf] %vm4085_vm0, %v4412_v49  ;;  %v4413_v54 = vpack.c.bf16 %v4010_v40, %v4010_v40  ;;  %v3451_v22 = vpop.f32.mrb[66].mxu0 }
 0x888   : > { %4101 = vst.msk [vmem:[%s6190_s10 + $0x3c] sm:$0xf] %vm4085_vm0, %v4415_v51  ;;  %v4684_v50 = vpop.f32.mrb[67].mxu0 }
 0x889   : > { %4099 = vst.msk [vmem:[%s6190_s10 + $0x34] sm:$0xf] %vm4085_vm0, %v4413_v54 }
 0x88a PF: > { %s13_s14 = sadd.s32 1, %s4846_s14   ;;  %s6252_s12 = smov %s4842_s13 }
 0x88b   : > { %p10_p5 = scmp.ge.s32.totalorder %s13_s14, 4   ;;  %s6253_s13 = smov %s6255_s15 }
 0x88d   :  { %12 = sbr.rel (!%p10_p5) target bundleno = 2 (0x2), region = 70 }

</bundles_post_ra>
